<compile_context>
chip_gen: v7x
topology: tpu7x:2x2x1
jax: 0.10.0
libtpu: 0.0.40
codegen_flags: <defaults>
</compile_context>

<pallas_src>
import jax
import jax.numpy as jnp
from jax.experimental import pallas as pl
from jax.experimental.pallas import tpu as pltpu

NUM_CLASSES = 24
HP = 128   # padded feature / hidden lane width
OP = 128   # padded output lane width (sliced back to NUM_CLASSES)


def _make_gcn_kernel(block_rows, a_resident):
    def kernel(x_hbm, a_ref, scale_ref, p_ref, w_ref, b_ref, wo_ref, bo_ref,
               out_ref, h0_scr, h1_scr, pooled_scr, x_sem):
        layer = pl.program_id(0)
        blk = pl.program_id(1)
        n_layers = pl.num_programs(0)
        n_blk = pl.num_programs(1)
        row0 = pl.multiple_of(blk * block_rows, block_rows)
        is_last_layer = layer == n_layers - 1

        # First grid step: DMA the padded bf16 node features straight into ping slot 0
        # (x is never resident anywhere else in VMEM) and zero the pooled accumulator.
        @pl.when(jnp.logical_and(layer == 0, blk == 0))
        def _init():
            cp = pltpu.make_async_copy(x_hbm, h0_scr, x_sem)
            cp.start()
            cp.wait()
            pooled_scr[...] = jnp.zeros_like(pooled_scr)

        def layer_step(src_ref, dst_ref):
            if a_resident:
                a_blk = a_ref[pl.ds(row0, block_rows), :]        # slice of VMEM-resident A
            else:
                a_blk = a_ref[...]                               # streamed row block
            # Aggregation over incoming edges (bf16 x bf16 MXU, f32 accumulate).
            agg = jnp.dot(a_blk, src_ref[...],
                          preferred_element_type=jnp.float32)    # [block, HP] f32
            # aggr='add' (scale 1) for layer 0, aggr='mean' (1/deg) for layers 1, 2.
            agg = agg * scale_ref[0]                             # [block, 1] per-layer scale
            # Fused rel/root GEMM: z = [agg | h_self] (bf16), W = [[W_rel], [W_root]] (bf16).
            h_self = src_ref[pl.ds(row0, block_rows), :]         # bf16 [block, HP]
            z = jnp.concatenate([agg.astype(jnp.bfloat16), h_self], axis=-1)
            h_new = jnp.dot(z, w_ref[0], preferred_element_type=jnp.float32) + b_ref[0]
            h_new = jnp.maximum(h_new, 0.0)
            dst_ref[pl.ds(row0, block_rows), :] = h_new.astype(jnp.bfloat16)

            # Accumulate the global mean pool on the final layer's output rows (f32).
            @pl.when(is_last_layer)
            def _pool():
                pooled_scr[...] += jnp.dot(p_ref[...], h_new,
                                           preferred_element_type=jnp.float32)

        even = (layer % 2) == 0

        @pl.when(even)
        def _even():     # layers 0 and 2: read h0, write h1
            layer_step(h0_scr, h1_scr)

        @pl.when(jnp.logical_not(even))
        def _odd():      # layer 1: read h1, write h0
            layer_step(h1_scr, h0_scr)

        # Very last step: output linear on the pooled graph embeddings (bf16 weights).
        @pl.when(jnp.logical_and(is_last_layer, blk == n_blk - 1))
        def _finalize():
            out_ref[...] = (jnp.dot(pooled_scr[...].astype(jnp.bfloat16), wo_ref[...],
                                    preferred_element_type=jnp.float32) + bo_ref[...])

    return kernel


def graph_conv_model_forward(x, edge_index, batch, params, num_graphs, *,
                             block_rows=256, force_stream_a=False):
    """x: [N, F] f32; edge_index: [2, E] int32 (row0=src, row1=dst); batch: [N] int32."""
    assert block_rows % 16 == 0
    N, F = x.shape
    (w1r, w1s, b1, w2r, w2s, b2, w3r, w3s, b3, wo, bo) = params
    H = w1r.shape[1]
    assert F <= HP and H <= HP and NUM_CLASSES <= OP

    n_blocks = pl.cdiv(N, block_rows)
    N_pad = n_blocks * block_rows
    G_pad = max(8, ((num_graphs + 7) // 8) * 8)

    src, dst = edge_index[0], edge_index[1]
    # Dense adjacency: A[i, j] = #edges j -> i (messages flow src -> dst, PyG convention).
    # Padded rows/cols (N..N_pad) are ZERO; P's padded columns are zero too (see invariant).
    a = jnp.zeros((N_pad, N_pad), jnp.float32).at[dst, src].add(1.0)
    deg = a.sum(axis=1, keepdims=True)
    inv_deg = 1.0 / jnp.maximum(deg, 1.0)          # zero-degree rows: agg == 0 anyway
    a_bf16 = a.astype(jnp.bfloat16)                # small integer counts -> exact in bf16

    # Per-layer row scale stacked on the layer axis: [ones, 1/deg, 1/deg]  -> [3, N_pad, 1].
    scale = jnp.stack([jnp.ones_like(inv_deg), inv_deg, inv_deg])

    # Mean-pool matrix P: [G_pad, N_pad] f32 (padded rows/cols are zero).
    gids = jnp.arange(G_pad, dtype=batch.dtype)
    one_hot = (batch[None, :] == gids[:, None]).astype(jnp.float32)      # [G_pad, N]
    counts = one_hot.sum(axis=1, keepdims=True)
    p = one_hot / jnp.maximum(counts, 1.0)
    p_pad = jnp.zeros((G_pad, N_pad), jnp.float32).at[:, :N].set(p)

    # Node features, zero-padded and pre-cast to bf16 (DMA'd once into the bf16 h0 scratch).
    x_pad = jnp.zeros((N_pad, HP), jnp.bfloat16).at[:N, :F].set(x.astype(jnp.bfloat16))

    def fuse(wr, ws):
        k = wr.shape[0]
        w = jnp.zeros((2 * HP, HP), jnp.float32)
        w = w.at[:k, :H].set(wr)            # acts on the 'agg' half of z
        w = w.at[HP:HP + k, :H].set(ws)     # acts on the 'self' half of z
        return w.astype(jnp.bfloat16)

    def pad_b(b):
        return jnp.zeros((1, HP), jnp.float32).at[:, :H].set(b)

    w_all = jnp.stack([fuse(w1r, w1s), fuse(w2r, w2s), fuse(w3r, w3s)])   # [3, 2*HP, HP] bf16
    b_all = jnp.stack([pad_b(b1), pad_b(b2), pad_b(b3)])                  # [3, 1, HP]    f32
    wo_pad = (jnp.zeros((HP, OP), jnp.float32)
              .at[:H, :NUM_CLASSES].set(wo).astype(jnp.bfloat16))         # bf16
    bo_pad = jnp.zeros((1, OP), jnp.float32).at[:, :NUM_CLASSES].set(bo)  # f32

    # ---- per-generation VMEM budgeting ------------------------------------------------
    try:
        vmem_cap = int(pltpu.get_tpu_info().vmem_capacity_bytes)
    except Exception:
        vmem_cap = 64 * 1024 * 1024                      # conservative (v7x) fallback
    vmem_limit = min(int(vmem_cap * 0.8), 110 * 1024 * 1024)

    def vmem_estimate(resident):
        # Conservative: count 2 buffers for every BlockSpec-managed input.
        a_b = 2 * (N_pad * N_pad if resident else block_rows * N_pad) * 2   # bf16 A
        h_b = 2 * N_pad * HP * 2                                            # bf16 ping-pong
        p_b = 2 * G_pad * block_rows * 4
        w_b = 2 * (2 * HP * HP * 2 + HP * OP * 2 + 2 * HP * 4)              # weights + biases
        pool_b = G_pad * HP * 4
        scale_b = 2 * block_rows * 128 * 4                                  # lane-padded [.,1]
        return a_b + h_b + p_b + w_b + pool_b + scale_b + (4 << 20)         # + compiler slack

    a_resident = (not force_stream_a) and (vmem_estimate(True) <= vmem_limit)

    if a_resident:
        # Constant block index -> A is DMA'd from HBM exactly once and stays in VMEM.
        a_spec = pl.BlockSpec((N_pad, N_pad), lambda l, i: (0, 0))
    else:
        # Streamed row blocks (re-read once per layer) — only when A doesn't fit.
        a_spec = pl.BlockSpec((block_rows, N_pad), lambda l, i: (i, 0))

    kernel = _make_gcn_kernel(block_rows, a_resident)

    out_pad = pl.pallas_call(
        kernel,
        out_shape=jax.ShapeDtypeStruct((G_pad, OP), jnp.float32),
        grid_spec=pltpu.PrefetchScalarGridSpec(
            num_scalar_prefetch=0,
            grid=(3, n_blocks),                                            # (layer, row_block)
            in_specs=[
                pl.BlockSpec(memory_space=pl.ANY),                         # x (HBM; DMA'd once)
                a_spec,                                                    # adjacency (bf16)
                pl.BlockSpec((1, block_rows, 1), lambda l, i: (l, i, 0)),  # per-layer row scale
                pl.BlockSpec((G_pad, block_rows), lambda l, i: (0, i)),    # P column block
                pl.BlockSpec((1, 2 * HP, HP), lambda l, i: (l, 0, 0)),     # fused rel/root W (bf16)
                pl.BlockSpec((1, 1, HP), lambda l, i: (l, 0, 0)),          # per-layer bias (f32)
                pl.BlockSpec((HP, OP), lambda l, i: (0, 0)),               # output weight (bf16)
                pl.BlockSpec((1, OP), lambda l, i: (0, 0)),                # output bias (f32)
            ],
            out_specs=pl.BlockSpec((G_pad, OP), lambda l, i: (0, 0)),
            scratch_shapes=[
                pltpu.VMEM((N_pad, HP), jnp.bfloat16),   # h ping (bf16)
                pltpu.VMEM((N_pad, HP), jnp.bfloat16),   # h pong (bf16)
                pltpu.VMEM((G_pad, HP), jnp.float32),    # pooled accumulator
                pltpu.SemaphoreType.DMA(()),             # x HBM -> VMEM copy
            ],
        ),
        compiler_params=pltpu.CompilerParams(
            # Both axes carry VMEM-scratch dependencies in this fused single-call design
            # (layers are sequential; each layer reads every row block of the previous h),
            # so both must be "arbitrary". A 2-TC split (one pallas_call per layer with a
            # "parallel" row axis) only pays off when A is VMEM-resident (compute-bound).
            dimension_semantics=("arbitrary", "arbitrary"),
            vmem_limit_bytes=vmem_limit,
        ),
    )(x_pad, a_bf16, scale, p_pad, w_all, b_all, wo_pad, bo_pad)

    return out_pad[:num_graphs, :NUM_CLASSES]


def ref_forward(x, edge_index, batch, params, num_graphs):
    """Pure-JAX f32 reference of the PyTorch forward (eval mode)."""
    (w1r, w1s, b1, w2r, w2s, b2, w3r, w3s, b3, wo, bo) = params
    N = x.shape[0]
    src, dst = edge_index[0], edge_index[1]
    a = jnp.zeros((N, N), jnp.float32).at[dst, src].add(1.0)
    deg = a.sum(axis=1, keepdims=True)
    a_mean = a / jnp.maximum(deg, 1.0)
    h = jax.nn.relu(a @ x @ w1r + x @ w1s + b1)
    h = jax.nn.relu(a_mean @ h @ w2r + h @ w2s + b2)
    h = jax.nn.relu(a_mean @ h @ w3r + h @ w3s + b3)
    one_hot = (batch[None, :] == jnp.arange(num_graphs, dtype=batch.dtype)[:, None]).astype(jnp.float32)
    pooled = (one_hot @ h) / jnp.maximum(one_hot.sum(axis=1, keepdims=True), 1.0)
    return pooled @ wo + bo


def init_params(key, num_features, hidden, num_classes):
    ks = jax.random.split(key, 11)
    s = 0.1

    def mk(k, shape):
        return (s * jax.random.normal(k, shape)).astype(jnp.float32)

    w1r = mk(ks[0], (num_features, hidden))   # conv1.lin_rel.weight.T
    w1s = mk(ks[1], (num_features, hidden))   # conv1.lin_root.weight.T
    b1 = mk(ks[2], (1, hidden))
    w2r = mk(ks[3], (hidden, hidden))
    w2s = mk(ks[4], (hidden, hidden))
    b2 = mk(ks[5], (1, hidden))
    w3r = mk(ks[6], (hidden, hidden))
    w3s = mk(ks[7], (hidden, hidden))
    b3 = mk(ks[8], (1, hidden))
    wo = mk(ks[9], (hidden, num_classes))     # lin_out.weight.T
    bo = mk(ks[10], (1, num_classes))
    return (w1r, w1s, b1, w2r, w2s, b2, w3r, w3s, b3, wo, bo)


if __name__ == "__main__":
    key = jax.random.PRNGKey(0)
    k_x, k_e, k_p = jax.random.split(key, 3)

    # Small synthetic graph batch: 4 graphs x 64 nodes = 256 nodes, 16 features, hidden=32.
    N, F, H, G, E = 256, 16, 32, 4, 1024

    x = jax.random.normal(k_x, (N, F), jnp.float32)
    edge_index = jax.random.randint(k_e, (2, E), 0, N, jnp.int32)
    batch = jnp.repeat(jnp.arange(G, dtype=jnp.int32), N // G)

    params = init_params(k_p, F, H, NUM_CLASSES)
    ref = ref_forward(x, edge_index, batch, params, G)

    # 1) default path: block_rows=256, VMEM-resident A, single row block.
    out = graph_conv_model_forward(x, edge_index, batch, params, num_graphs=G)
    jax.block_until_ready(out)
    assert out.shape == (G, NUM_CLASSES), out.shape
    assert jnp.allclose(out, ref, atol=5e-2, rtol=5e-2), float(jnp.max(jnp.abs(out - ref)))

    # 2) multi-block path with resident A.
    out2 = graph_conv_model_forward(x, edge_index, batch, params, num_graphs=G, block_rows=128)
    jax.block_until_ready(out2)
    assert jnp.allclose(out2, ref, atol=5e-2, rtol=5e-2), float(jnp.max(jnp.abs(out2 - ref)))

    # 3) streamed-A fallback path (large-graph regime), multi-block.
    out3 = graph_conv_model_forward(x, edge_index, batch, params, num_graphs=G,
                                    block_rows=128, force_stream_a=True)
    jax.block_until_ready(out3)
    assert jnp.allclose(out3, ref, atol=5e-2, rtol=5e-2), float(jnp.max(jnp.abs(out3 - ref)))

    print("KERNEL_OK")
</pallas_src>

<mosaic_0001>
module attributes {stable_mosaic.version = 11 : i64} {
  func.func @kernel(%arg0: i32, %arg1: i32, %arg2: memref<256x128xbf16, #tpu.memory_space<any>>, %arg3: memref<256x256xbf16, #tpu.memory_space<vmem>>, %arg4: memref<1x256x1xf32, #tpu.memory_space<vmem>>, %arg5: memref<8x256xf32, #tpu.memory_space<vmem>>, %arg6: memref<1x256x128xbf16, #tpu.memory_space<vmem>>, %arg7: memref<1x1x128xf32, #tpu.memory_space<vmem>>, %arg8: memref<128x128xbf16, #tpu.memory_space<vmem>>, %arg9: memref<1x128xf32, #tpu.memory_space<vmem>>, %arg10: memref<8x128xf32, #tpu.memory_space<vmem>>, %arg11: memref<256x128xbf16, #tpu.memory_space<vmem>>, %arg12: memref<256x128xbf16, #tpu.memory_space<vmem>>, %arg13: memref<8x128xf32, #tpu.memory_space<vmem>>, %arg14: memref<!tpu.dma_semaphore, #tpu.memory_space<semaphore_mem>>) attributes {dimension_semantics = [#tpu.dimension_semantics<arbitrary>, #tpu.dimension_semantics<arbitrary>], iteration_bounds = array<i64: 3, 1>, scalar_prefetch = 0 : i64, scratch_operands = 4 : i64, tpu.core_type = #tpu.core_type<tc>, window_params = [{}, {pipeline_mode = #tpu.pipeline_mode<synchronous>, transform_indices = @transform_1, window_bounds = array<i64: 256, 256>}, {transform_indices = @transform_2, window_bounds = array<i64: 1, 256, 1>}, {transform_indices = @transform_3, window_bounds = array<i64: 8, 256>}, {transform_indices = @transform_4, window_bounds = array<i64: 1, 256, 128>}, {transform_indices = @transform_5, window_bounds = array<i64: 1, 1, 128>}, {pipeline_mode = #tpu.pipeline_mode<synchronous>, transform_indices = @transform_6, window_bounds = array<i64: 128, 128>}, {pipeline_mode = #tpu.pipeline_mode<synchronous>, transform_indices = @transform_7, window_bounds = array<i64: 1, 128>}, {pipeline_mode = #tpu.pipeline_mode<synchronous>, transform_indices = @transform_8, window_bounds = array<i64: 8, 128>}]} {
    %c256_i32 = arith.constant 256 : i32
    %0 = arith.muli %arg1, %c256_i32 : i32
    %1 = tpu.assume_multiple %0, 256 : i32
    %c2_i32 = arith.constant 2 : i32
    %2 = arith.cmpi eq, %arg0, %c2_i32 : i32
    %c0_i32 = arith.constant 0 : i32
    %3 = arith.cmpi eq, %arg0, %c0_i32 : i32
    %c0_i32_0 = arith.constant 0 : i32
    %4 = arith.cmpi eq, %arg1, %c0_i32_0 : i32
    %5 = arith.andi %3, %4 : i1
    %6 = arith.extui %5 : i1 to i32
    %c0_i32_1 = arith.constant 0 : i32
    %7 = arith.cmpi ne, %6, %c0_i32_1 : i32
    scf.if %7 {
      tpu.enqueue_dma source(%arg2 : memref<256x128xbf16, #tpu.memory_space<any>>) target(%arg11 : memref<256x128xbf16, #tpu.memory_space<vmem>>) target_semaphore(%arg14 : memref<!tpu.dma_semaphore, #tpu.memory_space<semaphore_mem>>)
      tpu.wait_dma2 semaphore(%arg14 : memref<!tpu.dma_semaphore, #tpu.memory_space<semaphore_mem>>) src(%arg2 : memref<256x128xbf16, #tpu.memory_space<any>>) dst(%arg11 : memref<256x128xbf16, #tpu.memory_space<vmem>>)
      %cst = arith.constant 0.000000e+00 : f32
      %28 = vector.broadcast %cst : f32 to vector<8x128xf32>
      %c0 = arith.constant 0 : index
      %c0_12 = arith.constant 0 : index
      %29 = vector.load %arg13[%c0, %c0_12] : memref<8x128xf32, #tpu.memory_space<vmem>>, vector<8x128xf32>
      tpu.vector_store %arg13[%c0, %c0_12], %28 {strides = array<i32>} : memref<8x128xf32, #tpu.memory_space<vmem>>, vector<8x128xf32>,
    } else {
    }
    %c2_i32_2 = arith.constant 2 : i32
    %c0_i32_3 = arith.constant 0 : i32
    %8 = arith.cmpi eq, %c2_i32_2, %c0_i32_3 : i32
    %c1_i32 = arith.constant 1 : i32
    %9 = arith.select %8, %c1_i32, %c2_i32_2 : i32
    %10 = arith.remsi %arg0, %9 : i32
    %c0_i32_4 = arith.constant 0 : i32
    %11 = arith.cmpi ne, %10, %c0_i32_4 : i32
    %c0_i32_5 = arith.constant 0 : i32
    %12 = arith.cmpi slt, %10, %c0_i32_5 : i32
    %c0_i32_6 = arith.constant 0 : i32
    %13 = arith.cmpi slt, %9, %c0_i32_6 : i32
    %14 = arith.xori %12, %13 : i1
    %15 = arith.andi %14, %11 : i1
    %16 = arith.addi %10, %9 : i32
    %17 = arith.select %15, %16, %10 : i32
    %c0_i32_7 = arith.constant 0 : i32
    %18 = arith.cmpi eq, %17, %c0_i32_7 : i32
    %19 = arith.extui %18 : i1 to i32
    %c0_i32_8 = arith.constant 0 : i32
    %20 = arith.cmpi ne, %19, %c0_i32_8 : i32
    scf.if %20 {
      %28 = arith.index_cast %1 : i32 to index
      %c0 = arith.constant 0 : index
      %29 = vector.load %arg3[%28, %c0] : memref<256x256xbf16, #tpu.memory_space<vmem>>, vector<256x256xbf16>
      %c0_12 = arith.constant 0 : index
      %c0_13 = arith.constant 0 : index
      %30 = vector.load %arg11[%c0_12, %c0_13] : memref<256x128xbf16, #tpu.memory_space<vmem>>, vector<256x128xbf16>
      %cst = arith.constant dense<0.000000e+00> : vector<256x128xf32>
      %31 = tpu.matmul %29, %30, %cst {dimension_numbers = #tpu.dot_dimension_numbers<[1], [0], [0], [1], [0, 0, 1, 1], [], []>} : vector<256x256xbf16>, vector<256x128xbf16>, vector<256x128xf32> -> vector<256x128xf32>
      %c0_14 = arith.constant 0 : index
      %c0_15 = arith.constant 0 : index
      %c0_16 = arith.constant 0 : index
      %32 = vector.load %arg4[%c0_14, %c0_15, %c0_16] : memref<1x256x1xf32, #tpu.memory_space<vmem>>, vector<1x256x1xf32>
      %33 = vector.shape_cast %32 : vector<1x256x1xf32> to vector<256x1xf32>
      %34 = vector.broadcast %33 : vector<256x1xf32> to vector<256x128xf32>
      %35 = arith.mulf %31, %34 : vector<256x128xf32>
      %36 = arith.index_cast %1 : i32 to index
      %c0_17 = arith.constant 0 : index
      %37 = vector.load %arg11[%36, %c0_17] : memref<256x128xbf16, #tpu.memory_space<vmem>>, vector<256x128xbf16>
      %38 = arith.truncf %35 : vector<256x128xf32> to vector<256x128xbf16>
      %39 = tpu.concatenate %38, %37 in 1 : vector<256x128xbf16>, vector<256x128xbf16> -> vector<256x256xbf16>
      %c0_18 = arith.constant 0 : index
      %c0_19 = arith.constant 0 : index
      %c0_20 = arith.constant 0 : index
      %40 = vector.load %arg6[%c0_18, %c0_19, %c0_20] : memref<1x256x128xbf16, #tpu.memory_space<vmem>>, vector<1x256x128xbf16>
      %41 = vector.shape_cast %40 : vector<1x256x128xbf16> to vector<256x128xbf16>
      %cst_21 = arith.constant dense<0.000000e+00> : vector<256x128xf32>
      %42 = tpu.matmul %39, %41, %cst_21 {dimension_numbers = #tpu.dot_dimension_numbers<[1], [0], [0], [1], [0, 0, 1, 1], [], []>} : vector<256x256xbf16>, vector<256x128xbf16>, vector<256x128xf32> -> vector<256x128xf32>
      %c0_22 = arith.constant 0 : index
      %c0_23 = arith.constant 0 : index
      %c0_24 = arith.constant 0 : index
      %43 = vector.load %arg7[%c0_22, %c0_23, %c0_24] : memref<1x1x128xf32, #tpu.memory_space<vmem>>, vector<1x1x128xf32>
      %44 = vector.shape_cast %43 : vector<1x1x128xf32> to vector<1x128xf32>
      %45 = vector.broadcast %44 : vector<1x128xf32> to vector<256x128xf32>
      %46 = arith.addf %42, %45 : vector<256x128xf32>
      %cst_25 = arith.constant 0.000000e+00 : f32
      %47 = vector.broadcast %cst_25 : f32 to vector<256x128xf32>
      %48 = arith.maximumf %46, %47 : vector<256x128xf32>
      %49 = arith.truncf %48 : vector<256x128xf32> to vector<256x128xbf16>
      %50 = arith.index_cast %1 : i32 to index
      %c0_26 = arith.constant 0 : index
      %51 = vector.load %arg12[%50, %c0_26] : memref<256x128xbf16, #tpu.memory_space<vmem>>, vector<256x128xbf16>
      tpu.vector_store %arg12[%50, %c0_26], %49 {strides = array<i32>} : memref<256x128xbf16, #tpu.memory_space<vmem>>, vector<256x128xbf16>,
      %52 = arith.extui %2 : i1 to i32
      %c0_i32_27 = arith.constant 0 : i32
      %53 = arith.cmpi ne, %52, %c0_i32_27 : i32
      scf.if %53 {
        %c0_28 = arith.constant 0 : index
        %c0_29 = arith.constant 0 : index
        %54 = vector.load %arg13[%c0_28, %c0_29] : memref<8x128xf32, #tpu.memory_space<vmem>>, vector<8x128xf32>
        %c0_30 = arith.constant 0 : index
        %c0_31 = arith.constant 0 : index
        %55 = vector.load %arg5[%c0_30, %c0_31] : memref<8x256xf32, #tpu.memory_space<vmem>>, vector<8x256xf32>
        %cst_32 = arith.constant dense<0.000000e+00> : vector<8x128xf32>
        %56 = tpu.matmul %55, %48, %cst_32 {dimension_numbers = #tpu.dot_dimension_numbers<[1], [0], [0], [1], [0, 0, 1, 1], [], []>} : vector<8x256xf32>, vector<256x128xf32>, vector<8x128xf32> -> vector<8x128xf32>
        %57 = arith.addf %54, %56 : vector<8x128xf32>
        %c0_33 = arith.constant 0 : index
        %c0_34 = arith.constant 0 : index
        %58 = vector.load %arg13[%c0_33, %c0_34] : memref<8x128xf32, #tpu.memory_space<vmem>>, vector<8x128xf32>
        tpu.vector_store %arg13[%c0_33, %c0_34], %57 {strides = array<i32>} : memref<8x128xf32, #tpu.memory_space<vmem>>, vector<8x128xf32>,
      } else {
      }
    } else {
    }
    %true = arith.constant true
    %21 = arith.xori %18, %true : i1
    %22 = arith.extui %21 : i1 to i32
    %c0_i32_9 = arith.constant 0 : i32
    %23 = arith.cmpi ne, %22, %c0_i32_9 : i32
    scf.if %23 {
      %28 = arith.index_cast %1 : i32 to index
      %c0 = arith.constant 0 : index
      %29 = vector.load %arg3[%28, %c0] : memref<256x256xbf16, #tpu.memory_space<vmem>>, vector<256x256xbf16>
      %c0_12 = arith.constant 0 : index
      %c0_13 = arith.constant 0 : index
      %30 = vector.load %arg12[%c0_12, %c0_13] : memref<256x128xbf16, #tpu.memory_space<vmem>>, vector<256x128xbf16>
      %cst = arith.constant dense<0.000000e+00> : vector<256x128xf32>
      %31 = tpu.matmul %29, %30, %cst {dimension_numbers = #tpu.dot_dimension_numbers<[1], [0], [0], [1], [0, 0, 1, 1], [], []>} : vector<256x256xbf16>, vector<256x128xbf16>, vector<256x128xf32> -> vector<256x128xf32>
      %c0_14 = arith.constant 0 : index
      %c0_15 = arith.constant 0 : index
      %c0_16 = arith.constant 0 : index
      %32 = vector.load %arg4[%c0_14, %c0_15, %c0_16] : memref<1x256x1xf32, #tpu.memory_space<vmem>>, vector<1x256x1xf32>
      %33 = vector.shape_cast %32 : vector<1x256x1xf32> to vector<256x1xf32>
      %34 = vector.broadcast %33 : vector<256x1xf32> to vector<256x128xf32>
      %35 = arith.mulf %31, %34 : vector<256x128xf32>
      %36 = arith.index_cast %1 : i32 to index
      %c0_17 = arith.constant 0 : index
      %37 = vector.load %arg12[%36, %c0_17] : memref<256x128xbf16, #tpu.memory_space<vmem>>, vector<256x128xbf16>
      %38 = arith.truncf %35 : vector<256x128xf32> to vector<256x128xbf16>
      %39 = tpu.concatenate %38, %37 in 1 : vector<256x128xbf16>, vector<256x128xbf16> -> vector<256x256xbf16>
      %c0_18 = arith.constant 0 : index
      %c0_19 = arith.constant 0 : index
      %c0_20 = arith.constant 0 : index
      %40 = vector.load %arg6[%c0_18, %c0_19, %c0_20] : memref<1x256x128xbf16, #tpu.memory_space<vmem>>, vector<1x256x128xbf16>
      %41 = vector.shape_cast %40 : vector<1x256x128xbf16> to vector<256x128xbf16>
      %cst_21 = arith.constant dense<0.000000e+00> : vector<256x128xf32>
      %42 = tpu.matmul %39, %41, %cst_21 {dimension_numbers = #tpu.dot_dimension_numbers<[1], [0], [0], [1], [0, 0, 1, 1], [], []>} : vector<256x256xbf16>, vector<256x128xbf16>, vector<256x128xf32> -> vector<256x128xf32>
      %c0_22 = arith.constant 0 : index
      %c0_23 = arith.constant 0 : index
      %c0_24 = arith.constant 0 : index
      %43 = vector.load %arg7[%c0_22, %c0_23, %c0_24] : memref<1x1x128xf32, #tpu.memory_space<vmem>>, vector<1x1x128xf32>
      %44 = vector.shape_cast %43 : vector<1x1x128xf32> to vector<1x128xf32>
      %45 = vector.broadcast %44 : vector<1x128xf32> to vector<256x128xf32>
      %46 = arith.addf %42, %45 : vector<256x128xf32>
      %cst_25 = arith.constant 0.000000e+00 : f32
      %47 = vector.broadcast %cst_25 : f32 to vector<256x128xf32>
      %48 = arith.maximumf %46, %47 : vector<256x128xf32>
      %49 = arith.truncf %48 : vector<256x128xf32> to vector<256x128xbf16>
      %50 = arith.index_cast %1 : i32 to index
      %c0_26 = arith.constant 0 : index
      %51 = vector.load %arg11[%50, %c0_26] : memref<256x128xbf16, #tpu.memory_space<vmem>>, vector<256x128xbf16>
      tpu.vector_store %arg11[%50, %c0_26], %49 {strides = array<i32>} : memref<256x128xbf16, #tpu.memory_space<vmem>>, vector<256x128xbf16>,
      %52 = arith.extui %2 : i1 to i32
      %c0_i32_27 = arith.constant 0 : i32
      %53 = arith.cmpi ne, %52, %c0_i32_27 : i32
      scf.if %53 {
        %c0_28 = arith.constant 0 : index
        %c0_29 = arith.constant 0 : index
        %54 = vector.load %arg13[%c0_28, %c0_29] : memref<8x128xf32, #tpu.memory_space<vmem>>, vector<8x128xf32>
        %c0_30 = arith.constant 0 : index
        %c0_31 = arith.constant 0 : index
        %55 = vector.load %arg5[%c0_30, %c0_31] : memref<8x256xf32, #tpu.memory_space<vmem>>, vector<8x256xf32>
        %cst_32 = arith.constant dense<0.000000e+00> : vector<8x128xf32>
        %56 = tpu.matmul %55, %48, %cst_32 {dimension_numbers = #tpu.dot_dimension_numbers<[1], [0], [0], [1], [0, 0, 1, 1], [], []>} : vector<8x256xf32>, vector<256x128xf32>, vector<8x128xf32> -> vector<8x128xf32>
        %57 = arith.addf %54, %56 : vector<8x128xf32>
        %c0_33 = arith.constant 0 : index
        %c0_34 = arith.constant 0 : index
        %58 = vector.load %arg13[%c0_33, %c0_34] : memref<8x128xf32, #tpu.memory_space<vmem>>, vector<8x128xf32>
        tpu.vector_store %arg13[%c0_33, %c0_34], %57 {strides = array<i32>} : memref<8x128xf32, #tpu.memory_space<vmem>>, vector<8x128xf32>,
      } else {
      }
    } else {
    }
    %c0_i32_10 = arith.constant 0 : i32
    %24 = arith.cmpi eq, %arg1, %c0_i32_10 : i32
    %25 = arith.andi %2, %24 : i1
    %26 = arith.extui %25 : i1 to i32
    %c0_i32_11 = arith.constant 0 : i32
    %27 = arith.cmpi ne, %26, %c0_i32_11 : i32
    scf.if %27 {
      %c0 = arith.constant 0 : index
      %c0_12 = arith.constant 0 : index
      %28 = vector.load %arg13[%c0, %c0_12] : memref<8x128xf32, #tpu.memory_space<vmem>>, vector<8x128xf32>
      %29 = arith.truncf %28 : vector<8x128xf32> to vector<8x128xbf16>
      %c0_13 = arith.constant 0 : index
      %c0_14 = arith.constant 0 : index
      %30 = vector.load %arg8[%c0_13, %c0_14] : memref<128x128xbf16, #tpu.memory_space<vmem>>, vector<128x128xbf16>
      %cst = arith.constant dense<0.000000e+00> : vector<8x128xf32>
      %31 = tpu.matmul %29, %30, %cst {dimension_numbers = #tpu.dot_dimension_numbers<[1], [0], [0], [1], [0, 0, 1, 1], [], []>} : vector<8x128xbf16>, vector<128x128xbf16>, vector<8x128xf32> -> vector<8x128xf32>
      %c0_15 = arith.constant 0 : index
      %c0_16 = arith.constant 0 : index
      %32 = vector.load %arg9[%c0_15, %c0_16] : memref<1x128xf32, #tpu.memory_space<vmem>>, vector<1x128xf32>
      %33 = vector.broadcast %32 : vector<1x128xf32> to vector<8x128xf32>
      %34 = arith.addf %31, %33 : vector<8x128xf32>
      %c0_17 = arith.constant 0 : index
      %c0_18 = arith.constant 0 : index
      %35 = vector.load %arg10[%c0_17, %c0_18] : memref<8x128xf32, #tpu.memory_space<vmem>>, vector<8x128xf32>
      tpu.vector_store %arg10[%c0_17, %c0_18], %34 {strides = array<i32>} : memref<8x128xf32, #tpu.memory_space<vmem>>, vector<8x128xf32>,
    } else {
    }
    return
  }
  func.func @transform_1(%arg0: i32, %arg1: i32) -> (i32, i32) {
    %c0_i32 = arith.constant 0 : i32
    %c0_i32_0 = arith.constant 0 : i32
    %c0_i32_1 = arith.constant 0 : i32
    return %c0_i32, %c0_i32_0 : i32, i32
  }
  func.func @transform_2(%arg0: i32, %arg1: i32) -> (i32, i32, i32) {
    %c0_i32 = arith.constant 0 : i32
    %c0_i32_0 = arith.constant 0 : i32
    return %arg0, %arg1, %c0_i32 : i32, i32, i32
  }
  func.func @transform_3(%arg0: i32, %arg1: i32) -> (i32, i32) {
    %c0_i32 = arith.constant 0 : i32
    %c0_i32_0 = arith.constant 0 : i32
    return %c0_i32, %arg1 : i32, i32
  }
  func.func @transform_4(%arg0: i32, %arg1: i32) -> (i32, i32, i32) {
    %c0_i32 = arith.constant 0 : i32
    %c0_i32_0 = arith.constant 0 : i32
    %c0_i32_1 = arith.constant 0 : i32
    return %arg0, %c0_i32, %c0_i32_0 : i32, i32, i32
  }
  func.func @transform_5(%arg0: i32, %arg1: i32) -> (i32, i32, i32) {
    %c0_i32 = arith.constant 0 : i32
    %c0_i32_0 = arith.constant 0 : i32
    %c0_i32_1 = arith.constant 0 : i32
    return %arg0, %c0_i32, %c0_i32_0 : i32, i32, i32
  }
  func.func @transform_6(%arg0: i32, %arg1: i32) -> (i32, i32) {
    %c0_i32 = arith.constant 0 : i32
    %c0_i32_0 = arith.constant 0 : i32
    %c0_i32_1 = arith.constant 0 : i32
    return %c0_i32, %c0_i32_0 : i32, i32
  }
  func.func @transform_7(%arg0: i32, %arg1: i32) -> (i32, i32) {
    %c0_i32 = arith.constant 0 : i32
    %c0_i32_0 = arith.constant 0 : i32
    %c0_i32_1 = arith.constant 0 : i32
    return %c0_i32, %c0_i32_0 : i32, i32
  }
  func.func @transform_8(%arg0: i32, %arg1: i32) -> (i32, i32) {
    %c0_i32 = arith.constant 0 : i32
    %c0_i32_0 = arith.constant 0 : i32
    %c0_i32_1 = arith.constant 0 : i32
    return %c0_i32, %c0_i32_0 : i32, i32
  }
}

</mosaic_0001>

<bundles_post_ra>
// kernel: tpu_custom_call.1
= control target key start
LH: loop header
LB: loop body
LE: loop exit
PB: predicated region body
PF: predicated region fallthrough
CT: control target
= control target key end

     0   :  { %13 = vsyncpa [#allocation7], 0  ;;  %s4906_s0 = inlined_call_operand.vmem [shape: bf16[256,128], index: 0, kind: input, shape index: {}]   ;;  %s4907_s1 = inlined_call_operand.vmem [shape: bf16[256,256], index: 1, kind: input, shape index: {}]   ;;  %s4908_s2 = inlined_call_operand.vmem [shape: f32[3,256,1], index: 2, kind: input, shape index: {}]   ;;  %s4909_s3 = inlined_call_operand.vmem [shape: f32[8,256], index: 3, kind: input, shape index: {}]   ;;  %s4910_s4 = inlined_call_operand.vmem [shape: bf16[3,256,128], index: 4, kind: input, shape index: {}]   ;;  %s4911_s5 = inlined_call_operand.hbm [shape: f32[3,1,128], index: 5, kind: input, shape index: {}]   ;;  %s4912_s6 = inlined_call_operand.hbm [shape: bf16[128,128], index: 6, kind: input, shape index: {}]   ;;  %s4913_s7 = inlined_call_operand.vmem [shape: f32[1,128], index: 7, kind: input, shape index: {}]   ;;  %s4914_s8 = inlined_call_operand.hbm [shape: f32[8,128], index: 8, kind: output, shape index: {}]  }
   0x1   :  { %15 = vsyncpa [#allocation7 + $0x1], 0 }
   0x2   :  { %16 = vsyncpa [#allocation10], 0 }
   0x3   :  { %17 = vsyncpa [#allocation8], 0  ;;  %s4070_s27 = smov 0   ;;  %s4072_s28 = smov 0  }
   0x4   :  { %s4074_s29 = smov 0   ;;  %s4076_s30 = smov 0  }
   0x5   :  { %s4078_s9 = smov 0   ;;  %s4080_s10 = smov 0  }
   0x6 LB: > { %s4919_s11 = sadd.s32 4294967295, %s4013_s10   ;;  %p156_p0 = scmp.ne.s32.totalorder %s3997_s28, %s3993_s27  ;;  %s4013_s10 = sphi %s4080_s10, %s23_s10   ;;  %s4009_s9 = sphi %s4078_s9, %s4934_s9   ;;  %s4005_s30 = sphi %s4076_s30, %s4933_s30   ;;  %s4001_s29 = sphi %s4074_s29, %s4932_s29   ;;  %s3997_s28 = sphi %s4072_s28, %s4931_s28   ;;  %s3993_s27 = sphi %s4070_s27, %s4930_s27  }
   0x7   : > { %p4102_p1 = scmp.eq.s32.totalorder %s4919_s11, 0  ;;  %p2902_p2 = scmp.ge.s32.totalorder %s4013_s10, 1 }
   0x8   : > { %p230_p3 = scmp.lt.s32.totalorder %s4013_s10, 4  ;;  %s4015_s15 = smov [#allocation9]  }
   0x9   : > { %s4920_s12 = scalar_select %p4102_p1, 1, 0 }
   0xa   : > { %p4110_p4 = por %p4102_p1, %p156_p0  ;;  %p4114_p5 = pnand %p2902_p2, %p230_p3 }
   0xb   : > { %s254_s16 = sshll.u32 %s4015_s15, 4  ;;  %s35_s18 = sadd.s32 1, %s4009_s9  ;;  %s255_s16 = int_to_ptr.vmem [resolvable:$true] %s254_s16 }
   0xc   : > { %s4921_s13 = scalar_select %p4110_p4, 1, 0 }
   0xd   : > { %s4922_s14 = scalar_select %p4114_p5, 1, 0 }
   0xe   : > { %p3659_p6 = pneg %p4114_p5  ;;  %s3869_s21 = scalar_lea.hbm %s4912_s6, 1024 }
   0xf   : > { %p3870_p8 = scmp.ne.s32.totalorder %s4912_s6, %s3869_s21  ;;  %p3876_p12 = scmp.lt.u32.totalorder %s3869_s21, %s4912_s6 }
  0x10   : > { %p4122_p7 = pnand %p3659_p6, %p4102_p1 }
  0x12   : > { %p3871_p9 = pneg %p4122_p7 }
  0x14   : > { %p3872_p10 = pnand %p3871_p9, %p3870_p8 }
  0x16   : > { %p3873_p11 = pneg %p3872_p10 }
  0x18   : > { %p3878_p13 = pnand %p3876_p12, %p3873_p11 }
  0x1a   : > { %3881 = shalt.err (!%p3878_p13)
}
  0x1b   : > { %s3882_s26 = scalar_lea.vmem %s255_s16, 1024  ;;  %p3890_p6 = scmp.lt.s32.totalorder %s255_s16, %s255_s16 }
  0x1c   : > { %p3883_p0 = scmp.ne.s32.totalorder %s255_s16, %s3882_s26  ;;  %p3891_p1 = scmp.lt.s32.totalorder %s3882_s26, %s3882_s26 }
  0x1e   : > { %p3885_p2 = pnand %p3883_p0, %p3871_p9  ;;  %p3892_p4 = por %p3891_p1, %p3890_p6 }
  0x20   : > { %p3886_p3 = pneg %p3885_p2 }
  0x22   : > { %p3893_p5 = pnand %p3892_p4, %p3886_p3 }
  0x24   : > { %3896 = shalt.err (!%p3893_p5)
}
  0x25   : > { %s4016_s27 = smov 64   ;;  %s4017_s15 = smov 4  }
  0x26   : > { %3662 = dma.hbm_to_vmem [thread:$0]  (!%p4122_p7), %s4912_s6, 1024, %s255_s16, [#allocation10], %s4016_s27, %s4016_s27, %s4017_s15  }
  0x27   : > { %p37_p1 = scmp.ge.s32.totalorder %s35_s18, 3  ;;  %s143_s21 = sadd.s32 1, %s4001_s29 }
  0x28   : > { %p150_p4 = scmp.ne.s32.totalorder %s4001_s29, %s3997_s28  ;;  %p151_p5 = scmp.eq.s32.totalorder %s4013_s10, 0 }
  0x29   : > { %s4936_s18 = smov (%p37_p1, %s35_s18), 0  ;;  %p3668_p9 = scmp.lt.s32.totalorder %s4013_s10, 3 }
  0x2a   : > { %p152_p8 = por %p151_p5, %p150_p4  ;;  %s140_s22 = ssub.s32 %s4009_s9, %s4936_s18 }
  0x2b   : > { %s292_s23 = sand.u32 1, %s4001_s29   ;;  %p141_p10 = scmp.eq.s32.totalorder %s140_s22, 0 }
  0x2c   : > { %s2906_s24 = sshll.u32 %s4009_s9, 4  ;;  %s295_s16 = scalar_lea.vmem [#allocation6], %s292_s23 }
  0x2d   : > { %s4155_s25 = scalar_select %p141_p10, %s4001_s29, %s143_s21  }
  0x2e   : > { %s4160_s19 = scalar_lea.hbm %s4911_s5, %s2906_s24  ;;  %s302_s27 = sshll.u32 %s295_s16, 4  ;;  %s4162_s27 = int_to_ptr.vmem [resolvable:$true] %s302_s27 }
  0x2f   : > { %p4164_p7 = pnand %p3668_p9, %p152_p8  ;;  %s293_s20 = scalar_lea.sflag [#allocation7], %s292_s23 }
  0x30   : > { %s3897_s21 = scalar_lea.hbm %s4160_s19, 16  ;;  %s3902_s17 = scalar_lea.hbm %s4911_s5, 48 }
  0x31   : > { %p3898_p11 = scmp.ne.s32.totalorder %s4160_s19, %s3897_s21  ;;  %p3899_p12 = pneg %p4164_p7 }
  0x32   : > { %p3903_p2 = scmp.lt.u32.totalorder %s4160_s19, %s4911_s5  ;;  %p3904_p3 = scmp.lt.u32.totalorder %s3902_s17, %s3897_s21 }
  0x33   : > { %p3900_p13 = pnand %p3899_p12, %p3898_p11  ;;  %p3906_p1 = scmp.lt.u32.totalorder %s3897_s21, %s4160_s19 }
  0x34   : > { %p3905_p6 = por %p3904_p3, %p3903_p2 }
  0x35   : > { %p3901_p0 = pneg %p3900_p13 }
  0x36   : > { %p3907_p4 = por %p3906_p1, %p3905_p6 }
  0x38   : > { %p3908_p5 = pnand %p3907_p4, %p3901_p0 }
  0x3a   : > { %3911 = shalt.err (!%p3908_p5)
}
  0x3b   : > { %s3912_s23 = scalar_lea.vmem %s4162_s27, 16  ;;  %s4018_s22 = smov [#allocation6]  }
  0x3c   : > { %p3913_p8 = scmp.ne.s32.totalorder %s4162_s27, %s3912_s23  ;;  %s3917_s24 = sshll.u32 %s4018_s22, 4  ;;  %s3918_s24 = int_to_ptr.vmem [resolvable:$false] %s3917_s24 }
  0x3d   : > { %s3919_s26 = scalar_lea.vmem %s3918_s24, 32  ;;  %p3920_p11 = scmp.lt.s32.totalorder %s4162_s27, %s3918_s24 }
  0x3e   : > { %p3915_p9 = pnand %p3913_p8, %p3899_p12  ;;  %p3921_p13 = scmp.lt.s32.totalorder %s3919_s26, %s3912_s23 }
  0x40   : > { %p3916_p10 = pneg %p3915_p9  ;;  %p3922_p2 = por %p3921_p13, %p3920_p11 }
  0x42   : > { %p3923_p3 = pnand %p3922_p2, %p3916_p10 }
  0x44   : > { %3926 = shalt.err (!%p3923_p3)
}
  0x45   : > { %3666 = dma.hbm_to_vmem [thread:$0]  (!%p4164_p7), %s4160_s19, 16, %s4162_s27, %s293_s20  }
  0x46   : > { %p4925_p0 = scmp.ne.s32.totalorder %s4922_s14, 0 }
  0x47   : > { %s313_s21 = sand.u32 (!%p4925_p0), 1, %s3997_s28   ;;  %p4926_p12 = scmp.ne.s32.totalorder (!%p4925_p0), %s4921_s13, 0 }
  0x48   : > { %311 = sbr.rel (%p4925_p0) target bundleno = 2020 (0x7e4), region = 48  ;;  %s314_s17 = scalar_lea.sflag (!%p4925_p0), [#allocation7], %s313_s21 }
  0x49   : > { %s4196_s16 = scalar_lea.vmem (!%p4925_p0), [#allocation6], %s313_s21 }
  0x4f   : > { %3978 = dma.done.wait (%p4926_p12), %s314_s17, 16  }
  0x50   : > { %3980 = vsyncadd (%p4926_p12), %s314_s17, 4294967280  ;;  %p4927_p6 = scmp.ne.s32.totalorder %s4920_s12, 0 }
  0x52   : > { %3982 = dma.done.wait (%p4927_p6), [#allocation10], 1024  }
  0x53   : > { %3984 = vsyncadd (%p4927_p6), [#allocation10], 4294966272  ;;  %p365_p7 = scmp.lt.s32.totalorder %s4005_s30, 2  ;;  %p387_p1 = scmp.eq.s32.totalorder %s4005_s30, 2 }
  0x54   : > { %p388_p4 = scmp.eq.s32.totalorder %s4005_s30, 0 }
  0x55   : > { %s366_s14 = scalar_select %p365_p7, %s4005_s30, 2 }
  0x56   : > { %393 = sbr.rel (!%p388_p4) target bundleno = 99 (0x63), region = 60  ;;  %v426_v0 = vld [vmem:[%s4906_s0] sm:$0xff] (%p388_p4)  ;;  %v428_v1 = vld [vmem:[%s4906_s0 + $0x8] sm:$0xff] (%p388_p4)  ;;  %v430_v2 = vld [vmem:[%s4906_s0 + $0x10] sm:$0xff] (%p388_p4) }
  0x57   : > { %s3034_s19 = sshll.u32 %s366_s14, 8  ;;  %s3035_s27 = sshll.u32 %s366_s14, 7  ;;  %427 = vst [vmem:[#allocation2] sm:$0xff] (%p388_p4), %v426_v0  ;;  %429 = vst [vmem:[#allocation2 + $0x8] sm:$0xff] (%p388_p4), %v428_v1  ;;  %v432_v3 = vld [vmem:[%s4906_s0 + $0x18] sm:$0xff] (%p388_p4)  ;;  %v434_v4 = vld [vmem:[%s4906_s0 + $0x20] sm:$0xff] (%p388_p4) }
  0x58   : > { %s4213_s13 = scalar_lea.vmem %s4908_s2, %s3034_s19  ;;  %s4218_s12 = scalar_lea.vmem %s4910_s4, %s3035_s27  ;;  %431 = vst [vmem:[#allocation2 + $0x10] sm:$0xff] (%p388_p4), %v430_v2  ;;  %v436_v5 = vld [vmem:[%s4906_s0 + $0x28] sm:$0xff] (%p388_p4)  ;;  %433 = vst [vmem:[#allocation2 + $0x18] sm:$0xff] (%p388_p4), %v432_v3  ;;  %v438_v6 = vld [vmem:[%s4906_s0 + $0x30] sm:$0xff] (%p388_p4) }
  0x59   : > { %435 = vst [vmem:[#allocation2 + $0x20] sm:$0xff] (%p388_p4), %v434_v4  ;;  %437 = vst [vmem:[#allocation2 + $0x28] sm:$0xff] (%p388_p4), %v436_v5  ;;  %v440_v7 = vld [vmem:[%s4906_s0 + $0x38] sm:$0xff] (%p388_p4)  ;;  %v442_v8 = vld [vmem:[%s4906_s0 + $0x40] sm:$0xff] (%p388_p4) }
  0x5a   : > { %439 = vst [vmem:[#allocation2 + $0x30] sm:$0xff] (%p388_p4), %v438_v6  ;;  %441 = vst [vmem:[#allocation2 + $0x38] sm:$0xff] (%p388_p4), %v440_v7  ;;  %v444_v9 = vld [vmem:[%s4906_s0 + $0x48] sm:$0xff] (%p388_p4)  ;;  %v446_v10 = vld [vmem:[%s4906_s0 + $0x50] sm:$0xff] (%p388_p4) }
  0x5b   : > { %443 = vst [vmem:[#allocation2 + $0x40] sm:$0xff] (%p388_p4), %v442_v8  ;;  %v448_v11 = vld [vmem:[%s4906_s0 + $0x58] sm:$0xff] (%p388_p4)  ;;  %445 = vst [vmem:[#allocation2 + $0x48] sm:$0xff] (%p388_p4), %v444_v9  ;;  %v450_v12 = vld [vmem:[%s4906_s0 + $0x60] sm:$0xff] (%p388_p4) }
  0x5c   : > { %447 = vst [vmem:[#allocation2 + $0x50] sm:$0xff] (%p388_p4), %v446_v10  ;;  %449 = vst [vmem:[#allocation2 + $0x58] sm:$0xff] (%p388_p4), %v448_v11  ;;  %v452_v13 = vld [vmem:[%s4906_s0 + $0x68] sm:$0xff] (%p388_p4)  ;;  %v454_v14 = vld [vmem:[%s4906_s0 + $0x70] sm:$0xff] (%p388_p4) }
  0x5d   : > { %451 = vst [vmem:[#allocation2 + $0x60] sm:$0xff] %v450_v12  ;;  %453 = vst [vmem:[#allocation2 + $0x68] sm:$0xff] %v452_v13  ;;  %v456_v15 = vld [vmem:[%s4906_s0 + $0x78] sm:$0xff] }
  0x5e   : > { %455 = vst [vmem:[#allocation2 + $0x70] sm:$0xff] %v454_v14  ;;  %457 = vst [vmem:[#allocation2 + $0x78] sm:$0xff] %v456_v15 }
  0x5f   : > { %465 = vsyncadd [#allocation5], 2048 }
  0x60   : > { %3985 = dma.done.wait [#allocation5], 2048 }
  0x61   : > { %3986 = vsyncadd [#allocation5], 4294965248  ;;  %v4019_v16 = vmov 0.0  }
  0x62   : > { %470 = vst [vmem:[#allocation4] sm:$0xff] %v4019_v16 }
  0x63 PF: > { %p471_p5 = scmp.lt.s32.totalorder %s4005_s30, 0  ;;  %s472_s27 = ssub.s32 0, %s4005_s30 }
  0x64   : > { %s2914_s20 = smin.u32 %s4005_s30, %s472_s27 }
  0x65   : > { %s474_s23 = sand.u32 1, %s2914_s20  }
  0x66   : > { %s475_s22 = ssub.s32 0, %s474_s23 }
  0x67   : > { %s4938_s22 = smov (!%p471_p5, %s475_s22), %s474_s23 }
  0x68   : > { %p2916_p8 = scmp.lt.s32.totalorder %s4938_s22, 0  ;;  %s481_s11 = sadd.s32 2, %s4938_s22 }
  0x6a   : > { %s4940_s11 = smov (!%p2916_p8, %s481_s11), %s4938_s22 }
  0x6b   : > { %p2917_p9 = scmp.ne.s32.totalorder %s4940_s11, 0 }
  0x6c   : > { %v4274_v17 = vld [vmem:[#allocation2 + $0x40] sm:$0xff] (!%p2917_p9)  ;;  %v4276_v19 = vld [vmem:[#allocation2 + $0x48] sm:$0xff] (!%p2917_p9)  ;;  %v4020_v20 = vmov (!%p2917_p9), 0   ;;  %v4282_v22 = vld [vmem:[#allocation2 + $0x50] sm:$0xff] (!%p2917_p9)  ;;  %p2967_p10 = scmp.ne.s32.totalorder (!%p2917_p9), %s4005_s30, 2 }
  0x6d   : > { %486 = sbr.rel (%p2917_p9) target bundleno = 927 (0x39f), region = 98  ;;  %v524_v18 = vld [vmem:[#allocation2] sm:$0xff] (!%p2917_p9)  ;;  %3038 = vmatprep.subr.bf16.mxu0 (!%p2917_p9), %v4274_v17  ;;  %3729 = vset.pattern.permute.xlu0 (!%p2917_p9), %v4020_v20  ;;  %v4280_v21 = vld [vmem:[#allocation2 + $0x8] sm:$0xff] (!%p2917_p9)  ;;  %v4289_v24 = vld [vmem:[#allocation2 + $0x10] sm:$0xff] (!%p2917_p9) }
  0x6e   : > { %3039 = vmatpush3.bf16.msra.mxu0 (!%p2917_p9), %v524_v18  ;;  %3730 = vset.pattern.permute.xlu1 (!%p2917_p9), %v4020_v20  ;;  %v3733_v23 = vld [vmem:[%s4907_s1 + $0x4] ss:$8 sps:$4 sm:$0xff] (!%p2917_p9)   ;;  %v4291_v25 = vld [vmem:[#allocation2 + $0x58] sm:$0xff] (!%p2917_p9)  ;;  %v863_v30 = vld [vmem:[%s4213_s13 + $0x10] sm:$0xff] (!%p2917_p9) }
  0x6f   : > { %3040 = vmatprep.subr.bf16.mxu0 (!%p2917_p9), %v4276_v19  ;;  %1288 = vmatprep.mubr.bf16.mxu1 (!%p2917_p9), %v524_v18  ;;  %v861_v26 = vld [vmem:[%s4213_s13] sm:$0xff] (!%p2917_p9)  ;;  %v4296_v27 = vld [vmem:[#allocation2 + $0x18] sm:$0xff] (!%p2917_p9)  ;;  %v862_v29 = vld [vmem:[%s4213_s13 + $0x8] sm:$0xff] (!%p2917_p9) }
  0x70   : > { %732 = vmatprep.mubr.bf16.mxu0 (!%p2917_p9), %v3733_v23  ;;  %895 = vperm.xlu0 (!%p2917_p9), %3729, %v861_v26   ;;  %v4298_v28 = vld [vmem:[#allocation2 + $0x60] sm:$0xff] (!%p2917_p9)  ;;  %v864_v31 = vld [vmem:[%s4213_s13 + $0x18] sm:$0xff] (!%p2917_p9)  ;;  %v4307_v33 = vld [vmem:[#allocation2 + $0x68] sm:$0xff] (!%p2917_p9) }
  0x71   : > { %905 = vperm.xlu1 (!%p2917_p9), %3730, %v863_v30   ;;  %v4305_v32 = vld [vmem:[#allocation2 + $0x20] sm:$0xff] (!%p2917_p9)  ;;  %v866_v35 = vld [vmem:[%s4213_s13 + $0x28] sm:$0xff] (!%p2917_p9)  ;;  %v4315_v37 = vld [vmem:[#allocation2 + $0x70] sm:$0xff] (!%p2917_p9) }
  0x72   : > { %3041 = vmatpush3.bf16.msra.mxu0 (!%p2917_p9), %v4280_v21  ;;  %v865_v34 = vld [vmem:[%s4213_s13 + $0x20] sm:$0xff] (!%p2917_p9)  ;;  %v4313_v36 = vld [vmem:[#allocation2 + $0x28] sm:$0xff] (!%p2917_p9)  ;;  %v867_v38 = vld [vmem:[%s4213_s13 + $0x30] sm:$0xff] (!%p2917_p9) }
  0x73   : > { %3042 = vmatprep.subr.bf16.mxu0 (!%p2917_p9), %v4282_v22  ;;  %v868_v39 = vld [vmem:[%s4213_s13 + $0x38] sm:$0xff] (!%p2917_p9)  ;;  %v4321_v40 = vld [vmem:[#allocation2 + $0x30] sm:$0xff] (!%p2917_p9)  ;;  %v869_v42 = vld [vmem:[%s4213_s13 + $0x40] sm:$0xff] (!%p2917_p9) }
  0x74   : > { %900 = vperm.xlu0 %3729, %v862_v29   ;;  %v4323_v41 = vld [vmem:[#allocation2 + $0x78] sm:$0xff]  ;;  %v870_v43 = vld [vmem:[%s4213_s13 + $0x48] sm:$0xff]  ;;  %v871_v45 = vld [vmem:[%s4213_s13 + $0x50] sm:$0xff] }
  0x75   : > { %910 = vperm.xlu1 %3730, %v864_v31   ;;  %v4329_v44 = vld [vmem:[#allocation2 + $0x38] sm:$0xff]  ;;  %v3731_v46 = vld [vmem:[%s4907_s1] ss:$8 sps:$4 sm:$0xff]   ;;  %v3737_v52 = vld [vmem:[%s4907_s1 + $0x24] ss:$8 sps:$4 sm:$0xff]  }
  0x76   : > { %3043 = vmatpush3.bf16.msra.mxu0 %v4289_v24  ;;  %v3734_v47 = vld [vmem:[%s4907_s1 + $0x14] ss:$8 sps:$4 sm:$0xff]   ;;  %v873_v49 = vld [vmem:[%s4213_s13 + $0x60] sm:$0xff]  ;;  %v874_v50 = vld [vmem:[%s4213_s13 + $0x68] sm:$0xff] }
  0x77   : > { %3044 = vmatprep.subr.bf16.mxu0 %v4291_v25  ;;  %v872_v48 = vld [vmem:[%s4213_s13 + $0x58] sm:$0xff]  ;;  %v875_v53 = vld [vmem:[%s4213_s13 + $0x70] sm:$0xff]  ;;  %v877_v55 = vld [vmem:[%s4213_s13 + $0x80] sm:$0xff] }
  0x78   : > { %915 = vperm.xlu0 %3729, %v865_v34   ;;  %v3736_v51 = vld [vmem:[%s4907_s1 + $0x10] ss:$8 sps:$4 sm:$0xff]   ;;  %v878_v56 = vld [vmem:[%s4213_s13 + $0x88] sm:$0xff]  ;;  %v3740_v59 = vld [vmem:[%s4907_s1 + $0x34] ss:$8 sps:$4 sm:$0xff]  }
  0x79   : > { %920 = vperm.xlu1 %3730, %v866_v35   ;;  %v876_v54 = vld [vmem:[%s4213_s13 + $0x78] sm:$0xff]  ;;  %v879_v57 = vld [vmem:[%s4213_s13 + $0x90] sm:$0xff]  ;;  %v3739_v58 = vld [vmem:[%s4907_s1 + $0x20] ss:$8 sps:$4 sm:$0xff]  }
  0x7a   : > { %3045 = vmatpush3.bf16.msra.mxu0 %v4296_v27  ;;  %v880_v60 = vld [vmem:[%s4213_s13 + $0x98] sm:$0xff]  ;;  %v3779_v61 = vld [vmem:[%s4218_s12 + $0x40] sm:$0xff]   ;;  %v882_v0 = vld [vmem:[%s4213_s13 + $0xa8] sm:$0xff] }
  0x7b   : > { %3046 = vmatprep.subr.bf16.mxu0 %v4298_v28  ;;  %v3780_v62 = vld [vmem:[%s4218_s12] sm:$0xff]   ;;  %3150 = vmatprep.subr.bf16.mxu1 %v3779_v61  ;;  %v3781_v1 = vld [vmem:[%s4218_s12 + $0x48] sm:$0xff]   ;;  %v883_v3 = vld [vmem:[%s4213_s13 + $0xb0] sm:$0xff] }
  0x7c   : > { %925 = vperm.xlu0 %3729, %v867_v38   ;;  %v881_v63 = vld [vmem:[%s4213_s13 + $0xa0] sm:$0xff]  ;;  %3151 = vmatpush3.bf16.msra.mxu1 %v3780_v62  ;;  %v3782_v2 = vld [vmem:[%s4218_s12 + $0x8] sm:$0xff]   ;;  %v3742_v4 = vld [vmem:[%s4907_s1 + $0x30] ss:$8 sps:$4 sm:$0xff]  }
  0x7d   : > { %930 = vperm.xlu1 %3730, %v868_v39   ;;  %3152 = vmatprep.subr.bf16.mxu1 %v3781_v1  ;;  %v3743_v5 = vld [vmem:[%s4907_s1 + $0x44] ss:$8 sps:$4 sm:$0xff]   ;;  %v884_v6 = vld [vmem:[%s4213_s13 + $0xb8] sm:$0xff]  ;;  %v3783_v7 = vld [vmem:[%s4218_s12 + $0x50] sm:$0xff]  }
  0x7e   : > { %3047 = vmatpush3.bf16.msra.mxu0 %v4305_v32  ;;  %v3784_v8 = vld [vmem:[%s4218_s12 + $0x10] sm:$0xff]   ;;  %v885_v9 = vld [vmem:[%s4213_s13 + $0xc0] sm:$0xff]  ;;  %v886_v10 = vld [vmem:[%s4213_s13 + $0xc8] sm:$0xff] }
  0x7f   : > { %3048 = vmatprep.subr.bf16.mxu0 %v4307_v33  ;;  %v3785_v11 = vld [vmem:[%s4218_s12 + $0x58] sm:$0xff]   ;;  %v887_v13 = vld [vmem:[%s4213_s13 + $0xd0] sm:$0xff]  ;;  %v3745_v14 = vld [vmem:[%s4907_s1 + $0x40] ss:$8 sps:$4 sm:$0xff]  }
  0x80   : > { %935 = vperm.xlu0 %3729, %v869_v42   ;;  %3153 = vmatpush3.bf16.msra.mxu1 %v3782_v2  ;;  %v3786_v12 = vld [vmem:[%s4218_s12 + $0x18] sm:$0xff]   ;;  %v3787_v18 = vld [vmem:[%s4218_s12 + $0x60] sm:$0xff]   ;;  %v890_v26 = vld [vmem:[%s4213_s13 + $0xe8] sm:$0xff] }
  0x81   : > { %940 = vperm.xlu1 %3730, %v870_v43   ;;  %3154 = vmatprep.subr.bf16.mxu1 %v3783_v7  ;;  %v3746_v15 = vld [vmem:[%s4907_s1 + $0x54] ss:$8 sps:$4 sm:$0xff]   ;;  %v3788_v20 = vld [vmem:[%s4218_s12 + $0x20] sm:$0xff]   ;;  %v3789_v29 = vld [vmem:[%s4218_s12 + $0x68] sm:$0xff]  }
  0x82   : > { %3049 = vmatpush3.bf16.msra.mxu0 %v4313_v36  ;;  %v888_v16 = vld [vmem:[%s4213_s13 + $0xd8] sm:$0xff]  ;;  %v889_v23 = vld [vmem:[%s4213_s13 + $0xe0] sm:$0xff]  ;;  %v3790_v30 = vld [vmem:[%s4218_s12 + $0x28] sm:$0xff]  }
  0x83   : > { %3050 = vmatprep.subr.bf16.mxu0 %v4315_v37  ;;  %v891_v31 = vld [vmem:[%s4213_s13 + $0xf0] sm:$0xff]  ;;  %v3749_v35 = vld [vmem:[%s4907_s1 + $0x64] ss:$8 sps:$4 sm:$0xff]   ;;  %v892_v38 = vld [vmem:[%s4213_s13 + $0xf8] sm:$0xff] }
  0x84   : > { %945 = vperm.xlu0 %3729, %v871_v45   ;;  %3155 = vmatpush3.bf16.msra.mxu1 %v3784_v8  ;;  %v3748_v34 = vld [vmem:[%s4907_s1 + $0x50] ss:$8 sps:$4 sm:$0xff]   ;;  %v3751_v39 = vld [vmem:[%s4907_s1 + $0x60] ss:$8 sps:$4 sm:$0xff]   ;;  %v3752_v42 = vld [vmem:[%s4907_s1 + $0x74] ss:$8 sps:$4 sm:$0xff]  }
  0x85   : > { %950 = vperm.xlu1 %3730, %v872_v48   ;;  %3156 = vmatprep.subr.bf16.mxu1 %v3785_v11  ;;  %v3754_v43 = vld [vmem:[%s4907_s1 + $0x70] ss:$8 sps:$4 sm:$0xff]   ;;  %v3755_v45 = vld [vmem:[%s4907_s1 + $0x84] ss:$8 sps:$4 sm:$0xff]   ;;  %v3775_v62 = vld [vmem:[%s4907_s1 + $0xe0] ss:$8 sps:$4 sm:$0xff]  }
  0x86   : > { %3051 = vmatpush3.bf16.msra.mxu0 %v4321_v40  ;;  %v3760_v48 = vld [vmem:[%s4907_s1 + $0x90] ss:$8 sps:$4 sm:$0xff]   ;;  %v3773_v61 = vld [vmem:[%s4907_s1 + $0xe4] ss:$8 sps:$4 sm:$0xff]  }
  0x87   : > { %3052 = vmatprep.subr.bf16.mxu0 %v4323_v41 }
  0x88   : > { %955 = vperm.xlu0 %3729, %v873_v49   ;;  %3157 = vmatpush3.bf16.msra.mxu1 %v3786_v12  ;;  %v3761_v49 = vld [vmem:[%s4907_s1 + $0xa4] ss:$8 sps:$4 sm:$0xff]  }
  0x89   : > { %960 = vperm.xlu1 %3730, %v874_v50   ;;  %3158 = vmatprep.subr.bf16.mxu1 %v3787_v18  ;;  %v3763_v50 = vld [vmem:[%s4907_s1 + $0xa0] ss:$8 sps:$4 sm:$0xff]  }
  0x8a   : > { %3053 = vmatpush3.bf16.msra.mxu0 %v4329_v44 }
  0x8c   : > { %965 = vperm.xlu0 %3729, %v875_v53   ;;  %3159 = vmatpush3.bf16.msra.mxu1 %v3788_v20  ;;  %v3766_v53 = vld [vmem:[%s4907_s1 + $0xb0] ss:$8 sps:$4 sm:$0xff]  }
  0x8d   : > { %733 = vmatmul.mubr.bf16.vlgmr.msra.gmra.mrb[0].mxu0 %v3731_v46  ;;  %970 = vperm.xlu1 %3730, %v876_v54   ;;  %v3757_v46 = vld [vmem:[%s4907_s1 + $0x80] ss:$8 sps:$4 sm:$0xff]   ;;  %v3792_v54 = vld [vmem:[%s4218_s12 + $0x30] sm:$0xff]  }
  0x8e   : > { %740 = vmatprep.mubr.bf16.mxu0 %v3734_v47  ;;  %3160 = vmatprep.subr.bf16.mxu1 %v3789_v29  ;;  %v3758_v47 = vld [vmem:[%s4907_s1 + $0x94] ss:$8 sps:$4 sm:$0xff]  }
  0x90   : > { %975 = vperm.xlu0 %3729, %v877_v55   ;;  %3161 = vmatpush3.bf16.msra.mxu1 %v3790_v30  ;;  %v3767_v55 = vld [vmem:[%s4907_s1 + $0xc4] ss:$8 sps:$4 sm:$0xff]  }
  0x91   : > { %980 = vperm.xlu1 %3730, %v878_v56   ;;  %v3793_v56 = vld [vmem:[%s4218_s12 + $0x78] sm:$0xff]  }
  0x94   : > { %985 = vperm.xlu0 %3729, %v879_v57   ;;  %v3794_v57 = vld [vmem:[%s4218_s12 + $0x38] sm:$0xff]  }
  0x95   : > { %741 = vmatmul.mubr.bf16.gmra.mrb[4].mxu0 %v3736_v51  ;;  %990 = vperm.xlu1 %3730, %v880_v60   ;;  %v3764_v51 = vld [vmem:[%s4907_s1 + $0xb4] ss:$8 sps:$4 sm:$0xff]   ;;  %v3772_v60 = vld [vmem:[%s4907_s1 + $0xd0] ss:$8 sps:$4 sm:$0xff]  }
  0x96   : > { %748 = vmatprep.mubr.bf16.mxu0 %v3737_v52  ;;  %v3791_v52 = vld [vmem:[%s4218_s12 + $0x70] sm:$0xff]  }
  0x97   : > { %3162 = vmatprep.subr.bf16.mxu1 %v3791_v52 }
  0x98   : > { %995 = vperm.xlu0 %3729, %v881_v63   ;;  %3163 = vmatpush3.bf16.msra.mxu1 %v3792_v54  ;;  %v3776_v63 = vld [vmem:[%s4907_s1 + $0xf4] ss:$8 sps:$4 sm:$0xff]  }
  0x99   : > { %1000 = vperm.xlu1 %3730, %v882_v0   ;;  %3164 = vmatprep.subr.bf16.mxu1 %v3793_v56  ;;  %v3778_v0 = vld [vmem:[%s4907_s1 + $0xf0] ss:$8 sps:$4 sm:$0xff]  }
  0x9c   : > { %1005 = vperm.xlu0 %3729, %v883_v3   ;;  %3165 = vmatpush3.bf16.msra.mxu1 %v3794_v57 }
  0x9d   : > { %749 = vmatmul.mubr.bf16.gmra.mrb[8].mxu0 %v3739_v58  ;;  %1010 = vperm.xlu1 %3730, %v884_v6   ;;  %v3769_v58 = vld [vmem:[%s4907_s1 + $0xc0] ss:$8 sps:$4 sm:$0xff]  }
  0x9e   : > { %756 = vmatprep.mubr.bf16.mxu0 %v3740_v59  ;;  %v3770_v59 = vld [vmem:[%s4907_s1 + $0xd4] ss:$8 sps:$4 sm:$0xff]  }
  0xa0   : > { %1015 = vperm.xlu0 %3729, %v885_v9  }
  0xa1   : > { %1020 = vperm.xlu1 %3730, %v886_v10  }
  0xa4   : > { %1025 = vperm.xlu0 %3729, %v887_v13  }
  0xa5   : > { %757 = vmatmul.mubr.bf16.gmra.mrb[12].mxu0 %v3742_v4  ;;  %1030 = vperm.xlu1 %3730, %v888_v16  }
  0xa6   : > { %764 = vmatprep.mubr.bf16.mxu0 %v3743_v5 }
  0xa8   : > { %1035 = vperm.xlu0 %3729, %v889_v23  }
  0xa9   : > { %1040 = vperm.xlu1 %3730, %v890_v26  }
  0xac   : > { %1045 = vperm.xlu0 %3729, %v891_v31  }
  0xad   : > { %765 = vmatmul.mubr.bf16.gmra.mrb[16].mxu0 %v3745_v14  ;;  %1050 = vperm.xlu1 %3730, %v892_v38  }
  0xae   : > { %772 = vmatprep.mubr.bf16.mxu0 %v3746_v15 }
  0xb5   : > { %773 = vmatmul.mubr.bf16.gmra.mrb[20].mxu0 %v3748_v34 }
  0xb6   : > { %780 = vmatprep.mubr.bf16.mxu0 %v3749_v35 }
  0xbd   : > { %781 = vmatmul.mubr.bf16.gmra.mrb[24].mxu0 %v3751_v39 }
  0xbe   : > { %788 = vmatprep.mubr.bf16.mxu0 %v3752_v42 }
  0xc5   : > { %789 = vmatmul.mubr.bf16.gmra.mrb[28].mxu0 %v3754_v43 }
  0xc6   : > { %796 = vmatprep.mubr.bf16.mxu0 %v3755_v45 }
  0xcd   : > { %797 = vmatmul.mubr.bf16.gmra.mrb[32].mxu0 %v3757_v46 }
  0xce   : > { %804 = vmatprep.mubr.bf16.mxu0 %v3758_v47 }
  0xd5   : > { %805 = vmatmul.mubr.bf16.gmra.mrb[36].mxu0 %v3760_v48 }
  0xd6   : > { %812 = vmatprep.mubr.bf16.mxu0 %v3761_v49 }
  0xdd   : > { %813 = vmatmul.mubr.bf16.gmra.mrb[40].mxu0 %v3763_v50 }
  0xde   : > { %820 = vmatprep.mubr.bf16.mxu0 %v3764_v51 }
  0xe5   : > { %821 = vmatmul.mubr.bf16.gmra.mrb[44].mxu0 %v3766_v53 }
  0xe6   : > { %828 = vmatprep.mubr.bf16.mxu0 %v3767_v55 }
  0xed   : > { %829 = vmatmul.mubr.bf16.gmra.mrb[48].mxu0 %v3769_v58 }
  0xee   : > { %836 = vmatprep.mubr.bf16.mxu0 %v3770_v59 }
  0xef   : > { %v896_v1 = vpop.permute.xlu0 %895 }
  0xf0   : > { %v906_v11 = vpop.permute.xlu1 %905 }
  0xf3   : > { %v901_v8 = vpop.permute.xlu0 %900 }
  0xf4   : > { %v911_v23 = vpop.permute.xlu1 %910 }
  0xf5   : > { %837 = vmatmul.mubr.bf16.gmra.mrb[52].mxu0 %v3772_v60 }
  0xf6   : > { %844 = vmatprep.mubr.bf16.mxu0 %v3773_v61 }
  0xf7   : > { %v916_v43 = vpop.permute.xlu0 %915 }
  0xf8   : > { %v921_v45 = vpop.permute.xlu1 %920 }
  0xfb   : > { %v926_v54 = vpop.permute.xlu0 %925 }
  0xfc   : > { %v931_v55 = vpop.permute.xlu1 %930 }
  0xfd   : > { %845 = vmatmul.mubr.bf16.gmra.mrb[56].mxu0 %v3775_v62 }
  0xfe   : > { %852 = vmatprep.mubr.bf16.mxu0 %v3776_v63 }
 0x105   : > { %853 = vmatmul.mubr.bf16.gmra.mrb[60].mxu0 %v3778_v0  ;;  %v936_v0 = vpop.permute.xlu0 %935 }
 0x160   : > { %v3054_v2 = vpop.f32.mrb[0].mxu0 }
 0x161   : > { %v3055_v3 = vpop.f32.mrb[1].mxu0 }
 0x162   : > { %v3056_v4 = vadd.f32 %v3055_v3, %v3054_v2  ;;  %v3057_v5 = vpop.f32.mrb[2].mxu0 }
 0x163   : > { %v3058_v6 = vpop.f32.mrb[3].mxu0 }
 0x164   : > { %v3059_v7 = vadd.f32 %v3058_v6, %v3057_v5  ;;  %v1053_v9 = vmul.f32 %v3056_v4, %v896_v1  ;;  %v941_v1 = vpop.permute.xlu1 %940 }
 0x166   : > { %v1054_v10 = vmul.f32 %v3059_v7, %v901_v8 }
 0x168   : > { %v3060_v12 = vpop.f32.mrb[4].mxu0  ;;  %v1105_v13 = vpack.c.bf16 %v1054_v10, %v1053_v9  ;;  %v946_v10 = vpop.permute.xlu0 %945 }
 0x169   : > { %v3061_v14 = vpop.f32.mrb[5].mxu0 }
 0x16a   : > { %v3062_v15 = vadd.f32 %v3061_v14, %v3060_v12  ;;  %v3063_v16 = vpop.f32.mrb[6].mxu0  ;;  %1289 = vmatmul.mubr.bf16.vlgmr.msra.gmra.mrb[0].mxu1 %v1105_v13 }
 0x16b   : > { %v3064_v18 = vpop.f32.mrb[7].mxu0  ;;  %1296 = vmatprep.mubr.bf16.mxu1 %v4280_v21 }
 0x16c   : > { %v3065_v20 = vadd.f32 %v3064_v18, %v3063_v16  ;;  %v1055_v26 = vmul.f32 %v3062_v15, %v906_v11  ;;  %v951_v11 = vpop.permute.xlu1 %950 }
 0x16e   : > { %v1056_v29 = vmul.f32 %v3065_v20, %v911_v23 }
 0x170   : > { %v3066_v30 = vpop.f32.mrb[8].mxu0  ;;  %v1106_v31 = vpack.c.bf16 %v1056_v29, %v1055_v26  ;;  %v956_v26 = vpop.permute.xlu0 %955 }
 0x171   : > { %v3067_v34 = vpop.f32.mrb[9].mxu0  ;;  %v961_v29 = vpop.permute.xlu1 %960 }
 0x172   : > { %v3068_v35 = vadd.f32 %v3067_v34, %v3066_v30  ;;  %v3069_v38 = vpop.f32.mrb[10].mxu0  ;;  %1297 = vmatmul.mubr.bf16.gmra.mrb[4].mxu1 %v1106_v31 }
 0x173   : > { %v3070_v39 = vpop.f32.mrb[11].mxu0  ;;  %1304 = vmatprep.mubr.bf16.mxu1 %v4289_v24 }
 0x174   : > { %v3071_v42 = vadd.f32 %v3070_v39, %v3069_v38  ;;  %v1057_v46 = vmul.f32 %v3068_v35, %v916_v43 }
 0x176   : > { %v1058_v47 = vmul.f32 %v3071_v42, %v921_v45  ;;  %v966_v45 = vpop.permute.xlu0 %965 }
 0x178   : > { %v3072_v48 = vpop.f32.mrb[12].mxu0  ;;  %v1107_v21 = vpack.c.bf16 %v1058_v47, %v1057_v46  ;;  %v971_v46 = vpop.permute.xlu1 %970 }
 0x179   : > { %v3073_v49 = vpop.f32.mrb[13].mxu0 }
 0x17a   : > { %v3074_v50 = vadd.f32 %v3073_v49, %v3072_v48  ;;  %v3075_v51 = vpop.f32.mrb[14].mxu0  ;;  %1305 = vmatmul.mubr.bf16.gmra.mrb[8].mxu1 %v1107_v21 }
 0x17b   : > { %v3076_v52 = vpop.f32.mrb[15].mxu0  ;;  %1312 = vmatprep.mubr.bf16.mxu1 %v4296_v27 }
 0x17c   : > { %v3077_v53 = vadd.f32 %v3076_v52, %v3075_v51  ;;  %v1059_v56 = vmul.f32 %v3074_v50, %v926_v54  ;;  %v976_v54 = vpop.permute.xlu0 %975 }
 0x17e   : > { %v1060_v57 = vmul.f32 %v3077_v53, %v931_v55  ;;  %v981_v55 = vpop.permute.xlu1 %980 }
 0x180   : > { %v3078_v24 = vpop.f32.mrb[16].mxu0  ;;  %v1108_v58 = vpack.c.bf16 %v1060_v57, %v1059_v56 }
 0x181   : > { %v3079_v59 = vpop.f32.mrb[17].mxu0 }
 0x182   : > { %v3080_v60 = vadd.f32 %v3079_v59, %v3078_v24  ;;  %v3081_v61 = vpop.f32.mrb[18].mxu0  ;;  %1313 = vmatmul.mubr.bf16.gmra.mrb[12].mxu1 %v1108_v58 }
 0x183   : > { %v3082_v62 = vpop.f32.mrb[19].mxu0  ;;  %1320 = vmatprep.mubr.bf16.mxu1 %v4305_v32 }
 0x184   : > { %v3083_v63 = vadd.f32 %v3082_v62, %v3081_v61  ;;  %v1061_v2 = vmul.f32 %v3080_v60, %v936_v0  ;;  %v991_v0 = vpop.permute.xlu1 %990 }
 0x186   : > { %v1062_v3 = vmul.f32 %v3083_v63, %v941_v1  ;;  %v986_v63 = vpop.permute.xlu0 %985 }
 0x188   : > { %v3084_v27 = vpop.f32.mrb[20].mxu0  ;;  %v1109_v4 = vpack.c.bf16 %v1062_v3, %v1061_v2 }
 0x189   : > { %v3085_v5 = vpop.f32.mrb[21].mxu0 }
 0x18a   : > { %v3086_v6 = vadd.f32 %v3085_v5, %v3084_v27  ;;  %v3087_v7 = vpop.f32.mrb[22].mxu0  ;;  %1321 = vmatmul.mubr.bf16.gmra.mrb[16].mxu1 %v1109_v4 }
 0x18b   : > { %v3088_v8 = vpop.f32.mrb[23].mxu0  ;;  %1328 = vmatprep.mubr.bf16.mxu1 %v4313_v36 }
 0x18c   : > { %v3089_v9 = vadd.f32 %v3088_v8, %v3087_v7  ;;  %v1063_v12 = vmul.f32 %v3086_v6, %v946_v10  ;;  %v996_v8 = vpop.permute.xlu0 %995 }
 0x18e   : > { %v1064_v13 = vmul.f32 %v3089_v9, %v951_v11  ;;  %v1001_v9 = vpop.permute.xlu1 %1000 }
 0x190   : > { %v3090_v32 = vpop.f32.mrb[24].mxu0  ;;  %v1110_v14 = vpack.c.bf16 %v1064_v13, %v1063_v12 }
 0x191   : > { %v3091_v15 = vpop.f32.mrb[25].mxu0 }
 0x192   : > { %v3092_v16 = vadd.f32 %v3091_v15, %v3090_v32  ;;  %v3093_v18 = vpop.f32.mrb[26].mxu0  ;;  %1329 = vmatmul.mubr.bf16.gmra.mrb[20].mxu1 %v1110_v14 }
 0x193   : > { %v3094_v20 = vpop.f32.mrb[27].mxu0  ;;  %1336 = vmatprep.mubr.bf16.mxu1 %v4321_v40 }
 0x194   : > { %v3095_v23 = vadd.f32 %v3094_v20, %v3093_v18  ;;  %v1065_v30 = vmul.f32 %v3092_v16, %v956_v26  ;;  %v1006_v18 = vpop.permute.xlu0 %1005  ;;  %v1011_v20 = vpop.permute.xlu1 %1010 }
 0x196   : > { %v1066_v31 = vmul.f32 %v3095_v23, %v961_v29 }
 0x198   : > { %v3096_v36 = vpop.f32.mrb[28].mxu0  ;;  %v1111_v34 = vpack.c.bf16 %v1066_v31, %v1065_v30 }
 0x199   : > { %v3097_v35 = vpop.f32.mrb[29].mxu0 }
 0x19a   : > { %v3098_v38 = vadd.f32 %v3097_v35, %v3096_v36  ;;  %v3099_v39 = vpop.f32.mrb[30].mxu0  ;;  %1337 = vmatmul.mubr.bf16.gmra.mrb[24].mxu1 %v1111_v34 }
 0x19b   : > { %v3100_v42 = vpop.f32.mrb[31].mxu0  ;;  %1344 = vmatprep.mubr.bf16.mxu1 %v4329_v44 }
 0x19c   : > { %v3101_v43 = vadd.f32 %v3100_v42, %v3099_v39  ;;  %v1067_v47 = vmul.f32 %v3098_v38, %v966_v45  ;;  %v1016_v38 = vpop.permute.xlu0 %1015  ;;  %v1021_v39 = vpop.permute.xlu1 %1020 }
 0x19e   : > { %v1068_v48 = vmul.f32 %v3101_v43, %v971_v46 }
 0x1a0   : > { %v3102_v40 = vpop.f32.mrb[32].mxu0  ;;  %v1112_v21 = vpack.c.bf16 %v1068_v48, %v1067_v47 }
 0x1a1   : > { %v3103_v49 = vpop.f32.mrb[33].mxu0 }
 0x1a2   : > { %v3104_v50 = vadd.f32 %v3103_v49, %v3102_v40  ;;  %v3105_v51 = vpop.f32.mrb[34].mxu0  ;;  %1345 = vmatmul.mubr.bf16.gmra.mrb[28].mxu1 %v1112_v21  ;;  %v1026_v49 = vpop.permute.xlu0 %1025 }
 0x1a3   : > { %v3106_v52 = vpop.f32.mrb[35].mxu0  ;;  %1352 = vmatprep.mubr.bf16.mxu1 %v4274_v17 }
 0x1a4   : > { %v3107_v53 = vadd.f32 %v3106_v52, %v3105_v51  ;;  %v1069_v56 = vmul.f32 %v3104_v50, %v976_v54  ;;  %v1031_v50 = vpop.permute.xlu1 %1030 }
 0x1a6   : > { %v1070_v57 = vmul.f32 %v3107_v53, %v981_v55 }
 0x1a8   : > { %v3108_v44 = vpop.f32.mrb[36].mxu0  ;;  %v1113_v24 = vpack.c.bf16 %v1070_v57, %v1069_v56 }
 0x1a9   : > { %v3109_v58 = vpop.f32.mrb[37].mxu0 }
 0x1aa   : > { %v3110_v59 = vadd.f32 %v3109_v58, %v3108_v44  ;;  %v3111_v60 = vpop.f32.mrb[38].mxu0  ;;  %1353 = vmatmul.mubr.bf16.gmra.mrb[32].mxu1 %v1113_v24  ;;  %v1036_v24 = vpop.permute.xlu0 %1035 }
 0x1ab   : > { %v3112_v61 = vpop.f32.mrb[39].mxu0  ;;  %1360 = vmatprep.mubr.bf16.mxu1 %v4276_v19  ;;  %v1041_v58 = vpop.permute.xlu1 %1040 }
 0x1ac   : > { %v3113_v62 = vadd.f32 %v3112_v61, %v3111_v60  ;;  %v1071_v1 = vmul.f32 %v3110_v59, %v986_v63 }
 0x1ae   : > { %v1072_v2 = vmul.f32 %v3113_v62, %v991_v0 }
 0x1b0   : > { %v3114_v17 = vpop.f32.mrb[40].mxu0  ;;  %v1114_v3 = vpack.c.bf16 %v1072_v2, %v1071_v1 }
 0x1b1   : > { %v3115_v27 = vpop.f32.mrb[41].mxu0 }
 0x1b2   : > { %v3116_v4 = vadd.f32 %v3115_v27, %v3114_v17  ;;  %v3117_v5 = vpop.f32.mrb[42].mxu0  ;;  %1361 = vmatmul.mubr.bf16.gmra.mrb[36].mxu1 %v1114_v3  ;;  %v1046_v17 = vpop.permute.xlu0 %1045 }
 0x1b3   : > { %v3118_v6 = vpop.f32.mrb[43].mxu0  ;;  %1368 = vmatprep.mubr.bf16.mxu1 %v4282_v22  ;;  %v1051_v3 = vpop.permute.xlu1 %1050 }
 0x1b4   : > { %v3119_v7 = vadd.f32 %v3118_v6, %v3117_v5  ;;  %v1073_v10 = vmul.f32 %v3116_v4, %v996_v8  ;;  %v4479_v6 = vld [vmem:[%s4196_s16] ss:$0 sm:$0xff] }
 0x1b6   : > { %v1074_v11 = vmul.f32 %v3119_v7, %v1001_v9 }
 0x1b8   : > { %v3120_v19 = vpop.f32.mrb[44].mxu0  ;;  %v1115_v12 = vpack.c.bf16 %v1074_v11, %v1073_v10 }
 0x1b9   : > { %v3121_v13 = vpop.f32.mrb[45].mxu0 }
 0x1ba   : > { %v3122_v32 = vadd.f32 %v3121_v13, %v3120_v19  ;;  %v3123_v14 = vpop.f32.mrb[46].mxu0  ;;  %1369 = vmatmul.mubr.bf16.gmra.mrb[40].mxu1 %v1115_v12 }
 0x1bb   : > { %v3124_v15 = vpop.f32.mrb[47].mxu0  ;;  %1376 = vmatprep.mubr.bf16.mxu1 %v4291_v25 }
 0x1bc   : > { %v3125_v16 = vadd.f32 %v3124_v15, %v3123_v14  ;;  %v1075_v23 = vmul.f32 %v3122_v32, %v1006_v18 }
 0x1be   : > { %v1076_v26 = vmul.f32 %v3125_v16, %v1011_v20 }
 0x1c0   : > { %v3126_v22 = vpop.f32.mrb[48].mxu0  ;;  %v1116_v29 = vpack.c.bf16 %v1076_v26, %v1075_v23 }
 0x1c1   : > { %v3127_v30 = vpop.f32.mrb[49].mxu0 }
 0x1c2   : > { %v3128_v31 = vadd.f32 %v3127_v30, %v3126_v22  ;;  %v3129_v36 = vpop.f32.mrb[50].mxu0  ;;  %1377 = vmatmul.mubr.bf16.gmra.mrb[44].mxu1 %v1116_v29 }
 0x1c3   : > { %v3130_v34 = vpop.f32.mrb[51].mxu0  ;;  %1384 = vmatprep.mubr.bf16.mxu1 %v4298_v28 }
 0x1c4   : > { %v3131_v35 = vadd.f32 %v3130_v34, %v3129_v36  ;;  %v1077_v42 = vmul.f32 %v3128_v31, %v1016_v38 }
 0x1c6   : > { %v1078_v43 = vmul.f32 %v3131_v35, %v1021_v39 }
 0x1c8   : > { %v3132_v25 = vpop.f32.mrb[52].mxu0  ;;  %v1117_v45 = vpack.c.bf16 %v1078_v43, %v1077_v42 }
 0x1c9   : > { %v3133_v46 = vpop.f32.mrb[53].mxu0 }
 0x1ca   : > { %v3134_v47 = vadd.f32 %v3133_v46, %v3132_v25  ;;  %v3135_v48 = vpop.f32.mrb[54].mxu0  ;;  %1385 = vmatmul.mubr.bf16.gmra.mrb[48].mxu1 %v1117_v45 }
 0x1cb   : > { %v3136_v40 = vpop.f32.mrb[55].mxu0  ;;  %1392 = vmatprep.mubr.bf16.mxu1 %v4307_v33 }
 0x1cc   : > { %v3137_v21 = vadd.f32 %v3136_v40, %v3135_v48  ;;  %v1079_v51 = vmul.f32 %v3134_v47, %v1026_v49 }
 0x1ce   : > { %v1080_v52 = vmul.f32 %v3137_v21, %v1031_v50 }
 0x1d0   : > { %v3138_v28 = vpop.f32.mrb[56].mxu0  ;;  %v1118_v53 = vpack.c.bf16 %v1080_v52, %v1079_v51 }
 0x1d1   : > { %v3139_v54 = vpop.f32.mrb[57].mxu0 }
 0x1d2   : > { %v3140_v55 = vadd.f32 %v3139_v54, %v3138_v28  ;;  %v3141_v56 = vpop.f32.mrb[58].mxu0  ;;  %1393 = vmatmul.mubr.bf16.gmra.mrb[52].mxu1 %v1118_v53 }
 0x1d3   : > { %v3142_v57 = vpop.f32.mrb[59].mxu0  ;;  %1400 = vmatprep.mubr.bf16.mxu1 %v4315_v37 }
 0x1d4   : > { %v3143_v44 = vadd.f32 %v3142_v57, %v3141_v56  ;;  %v1081_v59 = vmul.f32 %v3140_v55, %v1036_v24 }
 0x1d6   : > { %v1082_v60 = vmul.f32 %v3143_v44, %v1041_v58 }
 0x1d8   : > { %v3144_v33 = vpop.f32.mrb[60].mxu0  ;;  %v1119_v61 = vpack.c.bf16 %v1082_v60, %v1081_v59 }
 0x1d9   : > { %v3145_v62 = vpop.f32.mrb[61].mxu0 }
 0x1da   : > { %v3146_v63 = vadd.f32 %v3145_v62, %v3144_v33  ;;  %v3147_v0 = vpop.f32.mrb[62].mxu0  ;;  %1401 = vmatmul.mubr.bf16.gmra.mrb[56].mxu1 %v1119_v61 }
 0x1db   : > { %v3148_v1 = vpop.f32.mrb[63].mxu0  ;;  %1408 = vmatprep.mubr.bf16.mxu1 %v4323_v41 }
 0x1dc   : > { %v3149_v2 = vadd.f32 %v3148_v1, %v3147_v0  ;;  %v1083_v27 = vmul.f32 %v3146_v63, %v1046_v17 }
 0x1de   : > { %v1084_v37 = vmul.f32 %v3149_v2, %v1051_v3 }
 0x1e0   : > { %v1120_v4 = vpack.c.bf16 %v1084_v37, %v1083_v27 }
 0x1e2   : > { %1409 = vmatmul.mubr.bf16.gmra.mrb[60].mxu1 %v1120_v4 }
 0x23d   : > { %v3166_v5 = vpop.f32.mrb[0].mxu1 }
 0x23e   : > { %v3167_v7 = vpop.f32.mrb[1].mxu1 }
 0x23f   : > { %v3168_v8 = vadd.f32 %v3167_v7, %v3166_v5  ;;  %v3169_v9 = vpop.f32.mrb[2].mxu1 }
 0x240   : > { %v3170_v10 = vpop.f32.mrb[3].mxu1 }
 0x241   : > { %v1291_v11 = vadd.f32 %v3168_v8, %v4479_v6  ;;  %v3171_v19 = vadd.f32 %v3170_v10, %v3169_v9 }
 0x243   : > { %v1294_v12 = vadd.f32 %v3171_v19, %v4479_v6  ;;  %v1417_v41 = vmax.f32 %v1291_v11, 0.0 }
 0x245   : > { %v1418_v13 = vmax.f32 %v1294_v12, 0.0  ;;  %v3172_v32 = vpop.f32.mrb[4].mxu1 }
 0x246   : > { %v3173_v14 = vpop.f32.mrb[5].mxu1 }
 0x247   : > { %v4483_v15 = vpack.c.bf16 %v1418_v13, %v1417_v41  ;;  %v3174_v16 = vadd.f32 %v3173_v14, %v3172_v32  ;;  %v3175_v18 = vpop.f32.mrb[6].mxu1 }
 0x248   : > { %v3176_v20 = vpop.f32.mrb[7].mxu1 }
 0x249   : > { %1467 = vst [vmem:[#allocation3] sm:$0xff] %v4483_v15  ;;  %v1299_v23 = vadd.f32 %v3174_v16, %v4479_v6  ;;  %v3177_v26 = vadd.f32 %v3176_v20, %v3175_v18 }
 0x24b   : > { %v1302_v22 = vadd.f32 %v3177_v26, %v4479_v6  ;;  %v1419_v29 = vmax.f32 %v1299_v23, 0.0 }
 0x24d   : > { %v1420_v30 = vmax.f32 %v1302_v22, 0.0  ;;  %v3178_v31 = vpop.f32.mrb[8].mxu1 }
 0x24e   : > { %v3179_v36 = vpop.f32.mrb[9].mxu1 }
 0x24f   : > { %v4488_v34 = vpack.c.bf16 %v1420_v30, %v1419_v29  ;;  %v3180_v35 = vadd.f32 %v3179_v36, %v3178_v31  ;;  %v3181_v38 = vpop.f32.mrb[10].mxu1 }
 0x250   : > { %v3182_v39 = vpop.f32.mrb[11].mxu1 }
 0x251   : > { %1468 = vst [vmem:[#allocation3 + $0x8] sm:$0xff] %v4488_v34  ;;  %v1307_v42 = vadd.f32 %v3180_v35, %v4479_v6  ;;  %v3183_v43 = vadd.f32 %v3182_v39, %v3181_v38 }
 0x253   : > { %v1310_v25 = vadd.f32 %v3183_v43, %v4479_v6  ;;  %v1421_v45 = vmax.f32 %v1307_v42, 0.0 }
 0x255   : > { %v1422_v46 = vmax.f32 %v1310_v25, 0.0  ;;  %v3184_v47 = vpop.f32.mrb[12].mxu1 }
 0x256   : > { %v3185_v48 = vpop.f32.mrb[13].mxu1 }
 0x257   : > { %v4493_v40 = vpack.c.bf16 %v1422_v46, %v1421_v45  ;;  %v3186_v21 = vadd.f32 %v3185_v48, %v3184_v47  ;;  %v3187_v49 = vpop.f32.mrb[14].mxu1 }
 0x258   : > { %v3188_v50 = vpop.f32.mrb[15].mxu1 }
 0x259   : > { %1469 = vst [vmem:[#allocation3 + $0x10] sm:$0xff] %v4493_v40  ;;  %v1315_v51 = vadd.f32 %v3186_v21, %v4479_v6  ;;  %v3189_v52 = vadd.f32 %v3188_v50, %v3187_v49 }
 0x25b   : > { %v1318_v28 = vadd.f32 %v3189_v52, %v4479_v6  ;;  %v1423_v53 = vmax.f32 %v1315_v51, 0.0 }
 0x25d   : > { %v1424_v54 = vmax.f32 %v1318_v28, 0.0  ;;  %v3190_v55 = vpop.f32.mrb[16].mxu1 }
 0x25e   : > { %v3191_v56 = vpop.f32.mrb[17].mxu1 }
 0x25f   : > { %v4498_v57 = vpack.c.bf16 %v1424_v54, %v1423_v53  ;;  %v3192_v44 = vadd.f32 %v3191_v56, %v3190_v55  ;;  %v3193_v24 = vpop.f32.mrb[18].mxu1 }
 0x260   : > { %v3194_v58 = vpop.f32.mrb[19].mxu1 }
 0x261   : > { %1470 = vst [vmem:[#allocation3 + $0x18] sm:$0xff] %v4498_v57  ;;  %v1323_v59 = vadd.f32 %v3192_v44, %v4479_v6  ;;  %v3195_v60 = vadd.f32 %v3194_v58, %v3193_v24 }
 0x263   : > { %v1326_v33 = vadd.f32 %v3195_v60, %v4479_v6  ;;  %v1425_v61 = vmax.f32 %v1323_v59, 0.0 }
 0x265   : > { %v1426_v62 = vmax.f32 %v1326_v33, 0.0  ;;  %v3196_v63 = vpop.f32.mrb[20].mxu1 }
 0x266   : > { %v3197_v0 = vpop.f32.mrb[21].mxu1 }
 0x267   : > { %v4503_v1 = vpack.c.bf16 %v1426_v62, %v1425_v61  ;;  %v3198_v2 = vadd.f32 %v3197_v0, %v3196_v63  ;;  %v3199_v17 = vpop.f32.mrb[22].mxu1 }
 0x268   : > { %v3200_v3 = vpop.f32.mrb[23].mxu1 }
 0x269   : > { %1471 = vst [vmem:[#allocation3 + $0x20] sm:$0xff] %v4503_v1  ;;  %v1331_v27 = vadd.f32 %v3198_v2, %v4479_v6  ;;  %v3201_v37 = vadd.f32 %v3200_v3, %v3199_v17 }
 0x26b   : > { %v1334_v4 = vadd.f32 %v3201_v37, %v4479_v6  ;;  %v1427_v5 = vmax.f32 %v1331_v27, 0.0 }
 0x26d   : > { %v1428_v7 = vmax.f32 %v1334_v4, 0.0  ;;  %v3202_v8 = vpop.f32.mrb[24].mxu1 }
 0x26e   : > { %v3203_v9 = vpop.f32.mrb[25].mxu1 }
 0x26f   : > { %v4508_v10 = vpack.c.bf16 %v1428_v7, %v1427_v5  ;;  %v3204_v11 = vadd.f32 %v3203_v9, %v3202_v8  ;;  %v3205_v19 = vpop.f32.mrb[26].mxu1 }
 0x270   : > { %v3206_v12 = vpop.f32.mrb[27].mxu1 }
 0x271   : > { %1472 = vst [vmem:[#allocation3 + $0x28] sm:$0xff] %v4508_v10  ;;  %v1339_v41 = vadd.f32 %v3204_v11, %v4479_v6  ;;  %v3207_v13 = vadd.f32 %v3206_v12, %v3205_v19 }
 0x273   : > { %v1342_v32 = vadd.f32 %v3207_v13, %v4479_v6  ;;  %v1429_v14 = vmax.f32 %v1339_v41, 0.0 }
 0x275   : > { %v1430_v16 = vmax.f32 %v1342_v32, 0.0  ;;  %v3208_v18 = vpop.f32.mrb[28].mxu1 }
 0x276   : > { %v3209_v20 = vpop.f32.mrb[29].mxu1 }
 0x277   : > { %v4513_v23 = vpack.c.bf16 %v1430_v16, %v1429_v14  ;;  %v3210_v26 = vadd.f32 %v3209_v20, %v3208_v18  ;;  %v3211_v22 = vpop.f32.mrb[30].mxu1 }
 0x278   : > { %v3212_v29 = vpop.f32.mrb[31].mxu1 }
 0x279   : > { %1473 = vst [vmem:[#allocation3 + $0x30] sm:$0xff] %v4513_v23  ;;  %v1347_v30 = vadd.f32 %v3210_v26, %v4479_v6  ;;  %v3213_v31 = vadd.f32 %v3212_v29, %v3211_v22 }
 0x27b   : > { %v1350_v36 = vadd.f32 %v3213_v31, %v4479_v6  ;;  %v1431_v35 = vmax.f32 %v1347_v30, 0.0 }
 0x27d   : > { %v1432_v38 = vmax.f32 %v1350_v36, 0.0  ;;  %v3214_v39 = vpop.f32.mrb[32].mxu1 }
 0x27e   : > { %v3215_v42 = vpop.f32.mrb[33].mxu1 }
 0x27f   : > { %v4518_v43 = vpack.c.bf16 %v1432_v38, %v1431_v35  ;;  %v3216_v25 = vadd.f32 %v3215_v42, %v3214_v39  ;;  %v3217_v45 = vpop.f32.mrb[34].mxu1 }
 0x280   : > { %v3218_v46 = vpop.f32.mrb[35].mxu1 }
 0x281   : > { %1474 = vst [vmem:[#allocation3 + $0x38] sm:$0xff] %v4518_v43  ;;  %v1355_v47 = vadd.f32 %v3216_v25, %v4479_v6  ;;  %v3219_v48 = vadd.f32 %v3218_v46, %v3217_v45 }
 0x283   : > { %v1358_v21 = vadd.f32 %v3219_v48, %v4479_v6  ;;  %v1433_v49 = vmax.f32 %v1355_v47, 0.0 }
 0x285   : > { %v1434_v50 = vmax.f32 %v1358_v21, 0.0  ;;  %v3220_v51 = vpop.f32.mrb[36].mxu1 }
 0x286   : > { %v3221_v52 = vpop.f32.mrb[37].mxu1 }
 0x287   : > { %v4523_v28 = vpack.c.bf16 %v1434_v50, %v1433_v49  ;;  %v3222_v53 = vadd.f32 %v3221_v52, %v3220_v51  ;;  %v3223_v54 = vpop.f32.mrb[38].mxu1 }
 0x288   : > { %v3224_v55 = vpop.f32.mrb[39].mxu1 }
 0x289   : > { %1475 = vst [vmem:[#allocation3 + $0x40] sm:$0xff] %v4523_v28  ;;  %v1363_v56 = vadd.f32 %v3222_v53, %v4479_v6  ;;  %v3225_v44 = vadd.f32 %v3224_v55, %v3223_v54  ;;  %3586 = vmatprep.subr.bf16.mxu0 (!%p2967_p10), %v4523_v28 }
 0x28a   : > { %3588 = vmatpush3.bf16.msra.mxu0 (!%p2967_p10), %v4483_v15 }
 0x28b   : > { %v1366_v24 = vadd.f32 %v3225_v44, %v4479_v6  ;;  %v1435_v58 = vmax.f32 %v1363_v56, 0.0 }
 0x28d   : > { %v1436_v59 = vmax.f32 %v1366_v24, 0.0  ;;  %v3226_v60 = vpop.f32.mrb[40].mxu1 }
 0x28e   : > { %v3227_v33 = vpop.f32.mrb[41].mxu1 }
 0x28f   : > { %v4528_v61 = vpack.c.bf16 %v1436_v59, %v1435_v58  ;;  %v3228_v62 = vadd.f32 %v3227_v33, %v3226_v60  ;;  %v3229_v63 = vpop.f32.mrb[42].mxu1 }
 0x290   : > { %v3230_v0 = vpop.f32.mrb[43].mxu1 }
 0x291   : > { %1476 = vst [vmem:[#allocation3 + $0x48] sm:$0xff] %v4528_v61  ;;  %v1371_v2 = vadd.f32 %v3228_v62, %v4479_v6  ;;  %v3231_v17 = vadd.f32 %v3230_v0, %v3229_v63  ;;  %3590 = vmatprep.subr.bf16.mxu0 (!%p2967_p10), %v4528_v61 }
 0x292   : > { %3592 = vmatpush3.bf16.msra.mxu0 (!%p2967_p10), %v4488_v34  ;;  %v1486_v34 = vld [vmem:[#allocation4] sm:$0xff] (!%p2967_p10) }
 0x293   : > { %v1374_v3 = vadd.f32 %v3231_v17, %v4479_v6  ;;  %v1437_v27 = vmax.f32 %v1371_v2, 0.0 }
 0x295   : > { %v1438_v37 = vmax.f32 %v1374_v3, 0.0  ;;  %v3232_v4 = vpop.f32.mrb[44].mxu1 }
 0x296   : > { %v3233_v5 = vpop.f32.mrb[45].mxu1 }
 0x297   : > { %v4533_v7 = vpack.c.bf16 %v1438_v37, %v1437_v27  ;;  %v3234_v8 = vadd.f32 %v3233_v5, %v3232_v4  ;;  %v3235_v9 = vpop.f32.mrb[46].mxu1 }
 0x298   : > { %v3236_v11 = vpop.f32.mrb[47].mxu1 }
 0x299   : > { %1477 = vst [vmem:[#allocation3 + $0x50] sm:$0xff] %v4533_v7  ;;  %v1379_v19 = vadd.f32 %v3234_v8, %v4479_v6  ;;  %v3237_v12 = vadd.f32 %v3236_v11, %v3235_v9  ;;  %v1488_v9 = vld [vmem:[%s4909_s3 + $0x8] sm:$0xff] (!%p2967_p10)  ;;  %3594 = vmatprep.subr.bf16.mxu0 (!%p2967_p10), %v4533_v7 }
 0x29a   : > { %1553 = vmatprep.mubr.f32.mxu0 (!%p2967_p10), %v1488_v9  ;;  %3596 = vmatpush3.bf16.msra.mxu0 (!%p2967_p10), %v4493_v40 }
 0x29b   : > { %v1382_v41 = vadd.f32 %v3237_v12, %v4479_v6  ;;  %v1439_v13 = vmax.f32 %v1379_v19, 0.0 }
 0x29d   : > { %v1440_v32 = vmax.f32 %v1382_v41, 0.0  ;;  %v3238_v14 = vpop.f32.mrb[48].mxu1 }
 0x29e   : > { %v3239_v16 = vpop.f32.mrb[49].mxu1 }
 0x29f   : > { %v1460_v18 = vpack.c.bf16 %v1440_v32, %v1439_v13  ;;  %v3240_v20 = vadd.f32 %v3239_v16, %v3238_v14  ;;  %v3241_v26 = vpop.f32.mrb[50].mxu1 }
 0x2a0   : > { %v3242_v22 = vpop.f32.mrb[51].mxu1 }
 0x2a1   : > { %1478 = vst [vmem:[#allocation3 + $0x58] sm:$0xff] %v1460_v18  ;;  %v1387_v29 = vadd.f32 %v3240_v20, %v4479_v6  ;;  %v3243_v30 = vadd.f32 %v3242_v22, %v3241_v26  ;;  %3598 = vmatprep.subr.bf16.mxu0 (!%p2967_p10), %v1460_v18 }
 0x2a2   : > { %3600 = vmatpush3.bf16.msra.mxu0 (!%p2967_p10), %v4498_v57 }
 0x2a3   : > { %v1390_v31 = vadd.f32 %v3243_v30, %v4479_v6  ;;  %v1441_v36 = vmax.f32 %v1387_v29, 0.0 }
 0x2a5   : > { %v1442_v35 = vmax.f32 %v1390_v31, 0.0  ;;  %v3244_v38 = vpop.f32.mrb[52].mxu1 }
 0x2a6   : > { %v3245_v39 = vpop.f32.mrb[53].mxu1 }
 0x2a7   : > { %v1461_v42 = vpack.c.bf16 %v1442_v35, %v1441_v36  ;;  %v3246_v25 = vadd.f32 %v3245_v39, %v3244_v38  ;;  %v3247_v45 = vpop.f32.mrb[54].mxu1 }
 0x2a8   : > { %v3248_v46 = vpop.f32.mrb[55].mxu1 }
 0x2a9   : > { %1479 = vst [vmem:[#allocation3 + $0x60] sm:$0xff] %v1461_v42  ;;  %v1395_v47 = vadd.f32 %v3246_v25, %v4479_v6  ;;  %v3249_v48 = vadd.f32 %v3248_v46, %v3247_v45  ;;  %3602 = vmatprep.subr.bf16.mxu0 (!%p2967_p10), %v1461_v42 }
 0x2aa   : > { %3604 = vmatpush3.bf16.msra.mxu0 (!%p2967_p10), %v4503_v1 }
 0x2ab   : > { %v1398_v21 = vadd.f32 %v3249_v48, %v4479_v6  ;;  %v1443_v49 = vmax.f32 %v1395_v47, 0.0 }
 0x2ad   : > { %v1444_v50 = vmax.f32 %v1398_v21, 0.0  ;;  %v3250_v51 = vpop.f32.mrb[56].mxu1 }
 0x2ae   : > { %v3251_v52 = vpop.f32.mrb[57].mxu1 }
 0x2af   : > { %v1462_v53 = vpack.c.bf16 %v1444_v50, %v1443_v49  ;;  %v3252_v54 = vadd.f32 %v3251_v52, %v3250_v51  ;;  %v3253_v55 = vpop.f32.mrb[58].mxu1 }
 0x2b0   : > { %v3254_v56 = vpop.f32.mrb[59].mxu1 }
 0x2b1   : > { %1480 = vst [vmem:[#allocation3 + $0x68] sm:$0xff] %v1462_v53  ;;  %v1403_v44 = vadd.f32 %v3252_v54, %v4479_v6  ;;  %v3255_v24 = vadd.f32 %v3254_v56, %v3253_v55  ;;  %3606 = vmatprep.subr.bf16.mxu0 (!%p2967_p10), %v1462_v53 }
 0x2b2   : > { %3608 = vmatpush3.bf16.msra.mxu0 (!%p2967_p10), %v4508_v10 }
 0x2b3   : > { %v1406_v58 = vadd.f32 %v3255_v24, %v4479_v6  ;;  %v1445_v59 = vmax.f32 %v1403_v44, 0.0 }
 0x2b5   : > { %v1446_v60 = vmax.f32 %v1406_v58, 0.0  ;;  %v3256_v33 = vpop.f32.mrb[60].mxu1 }
 0x2b6   : > { %v3257_v62 = vpop.f32.mrb[61].mxu1 }
 0x2b7   : > { %v1463_v63 = vpack.c.bf16 %v1446_v60, %v1445_v59  ;;  %v3258_v0 = vadd.f32 %v3257_v62, %v3256_v33  ;;  %v3259_v2 = vpop.f32.mrb[62].mxu1 }
 0x2b8   : > { %v3260_v17 = vpop.f32.mrb[63].mxu1 }
 0x2b9   : > { %1481 = vst [vmem:[#allocation3 + $0x70] sm:$0xff] %v1463_v63  ;;  %v1411_v3 = vadd.f32 %v3258_v0, %v4479_v6  ;;  %v3261_v27 = vadd.f32 %v3260_v17, %v3259_v2  ;;  %3610 = vmatprep.subr.bf16.mxu0 (!%p2967_p10), %v1463_v63 }
 0x2ba   : > { %3612 = vmatpush3.bf16.msra.mxu0 (!%p2967_p10), %v4513_v23 }
 0x2bb   : > { %v1414_v37 = vadd.f32 %v3261_v27, %v4479_v6  ;;  %v1447_v4 = vmax.f32 %v1411_v3, 0.0  ;;  %1485 = sbr.rel (%p2967_p10) target bundleno = 927 (0x39f), region = 102  ;;  %v1487_v6 = vld [vmem:[%s4909_s3] sm:$0xff] (!%p2967_p10) }
 0x2bd   : > { %v1448_v5 = vmax.f32 %v1414_v37, 0.0 }
 0x2bf   : > { %v1464_v8 = vpack.c.bf16 %v1448_v5, %v1447_v4 }
 0x2c1   : > { %1482 = vst [vmem:[#allocation3 + $0x78] sm:$0xff] %v1464_v8  ;;  %3614 = vmatprep.subr.bf16.mxu0 (!%p2967_p10), %v1464_v8 }
 0x2c2   : > { %3616 = vmatpush3.bf16.msra.mxu0 %v4518_v43 }
 0x2c5   : > { %1554 = vmatmul.mubr.f32.vlgmr.msra.gmra.mrb[0].mxu0 %v1487_v6 }
 0x398   : > { %v3294_v15 = vpop.f32.mrb[0].mxu0 }
 0x399   : > { %v3295_v40 = vpop.f32.mrb[1].mxu0 }
 0x39a   : > { %v3296_v57 = vadd.f32 %v3295_v40, %v3294_v15 }
 0x39c   : > { %v1559_v28 = vadd.f32 %v3296_v57, %v1486_v34 }
 0x39e   : > { %1560 = vst [vmem:[#allocation4] sm:$0xff] %v1559_v28 }
 0x39f PF: > { %p2968_p11 = scmp.eq.s32.totalorder %s4940_s11, 0 }
 0x3a0   : > { %v4565_v1 = vld [vmem:[#allocation3 + $0x40] sm:$0xff] (!%p2968_p11)  ;;  %v4567_v23 = vld [vmem:[#allocation3 + $0x48] sm:$0xff] (!%p2968_p11)  ;;  %v4021_v43 = vmov (!%p2968_p11), 0   ;;  %v4573_v7 = vld [vmem:[#allocation3 + $0x50] sm:$0xff] (!%p2968_p11)  ;;  %p3018_p13 = scmp.ne.s32.totalorder (!%p2968_p11), %s4005_s30, 2 }
 0x3a1   : > { %1564 = sbr.rel (%p2968_p11) target bundleno = 1747 (0x6d3), region = 106  ;;  %v1602_v10 = vld [vmem:[#allocation3] sm:$0xff] (!%p2968_p11)  ;;  %3297 = vmatprep.subr.bf16.mxu0 (!%p2968_p11), %v4565_v1  ;;  %3795 = vset.pattern.permute.xlu0 (!%p2968_p11), %v4021_v43  ;;  %v4571_v61 = vld [vmem:[#allocation3 + $0x8] sm:$0xff] (!%p2968_p11)  ;;  %v4580_v19 = vld [vmem:[#allocation3 + $0x10] sm:$0xff] (!%p2968_p11) }
 0x3a2   : > { %3298 = vmatpush3.bf16.msra.mxu0 (!%p2968_p11), %v1602_v10  ;;  %3796 = vset.pattern.permute.xlu1 (!%p2968_p11), %v4021_v43  ;;  %v3799_v11 = vld [vmem:[%s4907_s1 + $0x4] ss:$8 sps:$4 sm:$0xff] (!%p2968_p11)   ;;  %v4582_v12 = vld [vmem:[#allocation3 + $0x58] sm:$0xff] (!%p2968_p11)  ;;  %v1941_v16 = vld [vmem:[%s4213_s13 + $0x10] sm:$0xff] (!%p2968_p11) }
 0x3a3   : > { %3299 = vmatprep.subr.bf16.mxu0 (!%p2968_p11), %v4567_v23  ;;  %2366 = vmatprep.mubr.bf16.mxu1 (!%p2968_p11), %v1602_v10  ;;  %v1939_v41 = vld [vmem:[%s4213_s13] sm:$0xff] (!%p2968_p11)  ;;  %v4587_v13 = vld [vmem:[#allocation3 + $0x18] sm:$0xff] (!%p2968_p11)  ;;  %v1940_v14 = vld [vmem:[%s4213_s13 + $0x8] sm:$0xff] (!%p2968_p11) }
 0x3a4   : > { %1810 = vmatprep.mubr.bf16.mxu0 (!%p2968_p11), %v3799_v11  ;;  %1973 = vperm.xlu0 (!%p2968_p11), %3795, %v1939_v41   ;;  %v4589_v32 = vld [vmem:[#allocation3 + $0x60] sm:$0xff] (!%p2968_p11)  ;;  %v1942_v18 = vld [vmem:[%s4213_s13 + $0x18] sm:$0xff] (!%p2968_p11)  ;;  %v4598_v26 = vld [vmem:[#allocation3 + $0x68] sm:$0xff] (!%p2968_p11) }
 0x3a5   : > { %1983 = vperm.xlu1 (!%p2968_p11), %3796, %v1941_v16   ;;  %v4596_v20 = vld [vmem:[#allocation3 + $0x20] sm:$0xff] (!%p2968_p11)  ;;  %v1944_v29 = vld [vmem:[%s4213_s13 + $0x28] sm:$0xff] (!%p2968_p11)  ;;  %v4606_v31 = vld [vmem:[#allocation3 + $0x70] sm:$0xff] (!%p2968_p11) }
 0x3a6   : > { %3300 = vmatpush3.bf16.msra.mxu0 (!%p2968_p11), %v4571_v61  ;;  %v1943_v22 = vld [vmem:[%s4213_s13 + $0x20] sm:$0xff] (!%p2968_p11)  ;;  %v4604_v30 = vld [vmem:[#allocation3 + $0x28] sm:$0xff] (!%p2968_p11)  ;;  %v1945_v36 = vld [vmem:[%s4213_s13 + $0x30] sm:$0xff] (!%p2968_p11) }
 0x3a7   : > { %3301 = vmatprep.subr.bf16.mxu0 (!%p2968_p11), %v4573_v7  ;;  %v1946_v35 = vld [vmem:[%s4213_s13 + $0x38] sm:$0xff] (!%p2968_p11)  ;;  %v4612_v38 = vld [vmem:[#allocation3 + $0x30] sm:$0xff] (!%p2968_p11)  ;;  %v1947_v42 = vld [vmem:[%s4213_s13 + $0x40] sm:$0xff] (!%p2968_p11) }
 0x3a8   : > { %1978 = vperm.xlu0 %3795, %v1940_v14   ;;  %v4614_v39 = vld [vmem:[#allocation3 + $0x78] sm:$0xff]  ;;  %v1948_v25 = vld [vmem:[%s4213_s13 + $0x48] sm:$0xff]  ;;  %v1949_v46 = vld [vmem:[%s4213_s13 + $0x50] sm:$0xff] }
 0x3a9   : > { %1988 = vperm.xlu1 %3796, %v1942_v18   ;;  %v4620_v45 = vld [vmem:[#allocation3 + $0x38] sm:$0xff]  ;;  %v3797_v47 = vld [vmem:[%s4907_s1] ss:$8 sps:$4 sm:$0xff]   ;;  %v3803_v52 = vld [vmem:[%s4907_s1 + $0x24] ss:$8 sps:$4 sm:$0xff]  }
 0x3aa   : > { %3302 = vmatpush3.bf16.msra.mxu0 %v4580_v19  ;;  %v3800_v48 = vld [vmem:[%s4907_s1 + $0x14] ss:$8 sps:$4 sm:$0xff]   ;;  %v1951_v49 = vld [vmem:[%s4213_s13 + $0x60] sm:$0xff]  ;;  %v1952_v50 = vld [vmem:[%s4213_s13 + $0x68] sm:$0xff] }
 0x3ab   : > { %3303 = vmatprep.subr.bf16.mxu0 %v4582_v12  ;;  %v1950_v21 = vld [vmem:[%s4213_s13 + $0x58] sm:$0xff]  ;;  %v1953_v53 = vld [vmem:[%s4213_s13 + $0x70] sm:$0xff]  ;;  %v1955_v55 = vld [vmem:[%s4213_s13 + $0x80] sm:$0xff] }
 0x3ac   : > { %1993 = vperm.xlu0 %3795, %v1943_v22   ;;  %v3802_v51 = vld [vmem:[%s4907_s1 + $0x10] ss:$8 sps:$4 sm:$0xff]   ;;  %v1956_v56 = vld [vmem:[%s4213_s13 + $0x88] sm:$0xff]  ;;  %v3806_v58 = vld [vmem:[%s4907_s1 + $0x34] ss:$8 sps:$4 sm:$0xff]  }
 0x3ad   : > { %1998 = vperm.xlu1 %3796, %v1944_v29   ;;  %v1954_v54 = vld [vmem:[%s4213_s13 + $0x78] sm:$0xff]  ;;  %v1957_v44 = vld [vmem:[%s4213_s13 + $0x90] sm:$0xff]  ;;  %v3805_v24 = vld [vmem:[%s4907_s1 + $0x20] ss:$8 sps:$4 sm:$0xff]  }
 0x3ae   : > { %3304 = vmatpush3.bf16.msra.mxu0 %v4587_v13  ;;  %v1958_v59 = vld [vmem:[%s4213_s13 + $0x98] sm:$0xff]  ;;  %v3845_v60 = vld [vmem:[%s4218_s12 + $0x40] sm:$0xff]   ;;  %v1960_v63 = vld [vmem:[%s4213_s13 + $0xa8] sm:$0xff] }
 0x3af   : > { %3305 = vmatprep.subr.bf16.mxu0 %v4589_v32  ;;  %v3846_v33 = vld [vmem:[%s4218_s12] sm:$0xff]   ;;  %3409 = vmatprep.subr.bf16.mxu1 %v3845_v60  ;;  %v3847_v0 = vld [vmem:[%s4218_s12 + $0x48] sm:$0xff]   ;;  %v1961_v17 = vld [vmem:[%s4213_s13 + $0xb0] sm:$0xff] }
 0x3b0   : > { %2003 = vperm.xlu0 %3795, %v1945_v36   ;;  %v1959_v62 = vld [vmem:[%s4213_s13 + $0xa0] sm:$0xff]  ;;  %3410 = vmatpush3.bf16.msra.mxu1 %v3846_v33  ;;  %v3848_v2 = vld [vmem:[%s4218_s12 + $0x8] sm:$0xff]   ;;  %v3808_v3 = vld [vmem:[%s4907_s1 + $0x30] ss:$8 sps:$4 sm:$0xff]  }
 0x3b1   : > { %2008 = vperm.xlu1 %3796, %v1946_v35   ;;  %3411 = vmatprep.subr.bf16.mxu1 %v3847_v0  ;;  %v3809_v27 = vld [vmem:[%s4907_s1 + $0x44] ss:$8 sps:$4 sm:$0xff]   ;;  %v1962_v37 = vld [vmem:[%s4213_s13 + $0xb8] sm:$0xff]  ;;  %v3849_v4 = vld [vmem:[%s4218_s12 + $0x50] sm:$0xff]  }
 0x3b2   : > { %3306 = vmatpush3.bf16.msra.mxu0 %v4596_v20  ;;  %v3850_v5 = vld [vmem:[%s4218_s12 + $0x10] sm:$0xff]   ;;  %v1963_v8 = vld [vmem:[%s4213_s13 + $0xc0] sm:$0xff]  ;;  %v1964_v9 = vld [vmem:[%s4213_s13 + $0xc8] sm:$0xff] }
 0x3b3   : > { %3307 = vmatprep.subr.bf16.mxu0 %v4598_v26  ;;  %v3851_v6 = vld [vmem:[%s4218_s12 + $0x58] sm:$0xff]   ;;  %v1965_v34 = vld [vmem:[%s4213_s13 + $0xd0] sm:$0xff]  ;;  %v3811_v40 = vld [vmem:[%s4907_s1 + $0x40] ss:$8 sps:$4 sm:$0xff]  }
 0x3b4   : > { %2013 = vperm.xlu0 %3795, %v1947_v42   ;;  %3412 = vmatpush3.bf16.msra.mxu1 %v3848_v2  ;;  %v3852_v15 = vld [vmem:[%s4218_s12 + $0x18] sm:$0xff]   ;;  %v3853_v10 = vld [vmem:[%s4218_s12 + $0x60] sm:$0xff]   ;;  %v1968_v41 = vld [vmem:[%s4213_s13 + $0xe8] sm:$0xff] }
 0x3b5   : > { %2018 = vperm.xlu1 %3796, %v1948_v25   ;;  %3413 = vmatprep.subr.bf16.mxu1 %v3849_v4  ;;  %v3812_v57 = vld [vmem:[%s4907_s1 + $0x54] ss:$8 sps:$4 sm:$0xff]   ;;  %v3854_v43 = vld [vmem:[%s4218_s12 + $0x20] sm:$0xff]   ;;  %v3855_v14 = vld [vmem:[%s4218_s12 + $0x68] sm:$0xff]  }
 0x3b6   : > { %3308 = vmatpush3.bf16.msra.mxu0 %v4604_v30  ;;  %v1966_v28 = vld [vmem:[%s4213_s13 + $0xd8] sm:$0xff]  ;;  %v1967_v11 = vld [vmem:[%s4213_s13 + $0xe0] sm:$0xff]  ;;  %v3856_v16 = vld [vmem:[%s4218_s12 + $0x28] sm:$0xff]  }
 0x3b7   : > { %3309 = vmatprep.subr.bf16.mxu0 %v4606_v31  ;;  %v1969_v18 = vld [vmem:[%s4213_s13 + $0xf0] sm:$0xff]  ;;  %v3815_v29 = vld [vmem:[%s4907_s1 + $0x64] ss:$8 sps:$4 sm:$0xff]   ;;  %v1970_v36 = vld [vmem:[%s4213_s13 + $0xf8] sm:$0xff] }
 0x3b8   : > { %2023 = vperm.xlu0 %3795, %v1949_v46   ;;  %3414 = vmatpush3.bf16.msra.mxu1 %v3850_v5  ;;  %v3814_v22 = vld [vmem:[%s4907_s1 + $0x50] ss:$8 sps:$4 sm:$0xff]   ;;  %v3817_v35 = vld [vmem:[%s4907_s1 + $0x60] ss:$8 sps:$4 sm:$0xff]   ;;  %v3818_v42 = vld [vmem:[%s4907_s1 + $0x74] ss:$8 sps:$4 sm:$0xff]  }
 0x3b9   : > { %2028 = vperm.xlu1 %3796, %v1950_v21   ;;  %3415 = vmatprep.subr.bf16.mxu1 %v3851_v6  ;;  %v3820_v25 = vld [vmem:[%s4907_s1 + $0x70] ss:$8 sps:$4 sm:$0xff]   ;;  %v3821_v46 = vld [vmem:[%s4907_s1 + $0x84] ss:$8 sps:$4 sm:$0xff]   ;;  %v3841_v33 = vld [vmem:[%s4907_s1 + $0xe0] ss:$8 sps:$4 sm:$0xff]  }
 0x3ba   : > { %3310 = vmatpush3.bf16.msra.mxu0 %v4612_v38  ;;  %v3826_v21 = vld [vmem:[%s4907_s1 + $0x90] ss:$8 sps:$4 sm:$0xff]   ;;  %v3839_v60 = vld [vmem:[%s4907_s1 + $0xe4] ss:$8 sps:$4 sm:$0xff]  }
 0x3bb   : > { %3311 = vmatprep.subr.bf16.mxu0 %v4614_v39 }
 0x3bc   : > { %2033 = vperm.xlu0 %3795, %v1951_v49   ;;  %3416 = vmatpush3.bf16.msra.mxu1 %v3852_v15  ;;  %v3827_v49 = vld [vmem:[%s4907_s1 + $0xa4] ss:$8 sps:$4 sm:$0xff]  }
 0x3bd   : > { %2038 = vperm.xlu1 %3796, %v1952_v50   ;;  %3417 = vmatprep.subr.bf16.mxu1 %v3853_v10  ;;  %v3829_v50 = vld [vmem:[%s4907_s1 + $0xa0] ss:$8 sps:$4 sm:$0xff]  }
 0x3be   : > { %3312 = vmatpush3.bf16.msra.mxu0 %v4620_v45 }
 0x3c0   : > { %2043 = vperm.xlu0 %3795, %v1953_v53   ;;  %3418 = vmatpush3.bf16.msra.mxu1 %v3854_v43  ;;  %v3832_v53 = vld [vmem:[%s4907_s1 + $0xb0] ss:$8 sps:$4 sm:$0xff]  }
 0x3c1   : > { %1811 = vmatmul.mubr.bf16.vlgmr.msra.gmra.mrb[0].mxu0 %v3797_v47  ;;  %2048 = vperm.xlu1 %3796, %v1954_v54   ;;  %v3823_v47 = vld [vmem:[%s4907_s1 + $0x80] ss:$8 sps:$4 sm:$0xff]   ;;  %v3858_v54 = vld [vmem:[%s4218_s12 + $0x30] sm:$0xff]  }
 0x3c2   : > { %1818 = vmatprep.mubr.bf16.mxu0 %v3800_v48  ;;  %3419 = vmatprep.subr.bf16.mxu1 %v3855_v14  ;;  %v3824_v48 = vld [vmem:[%s4907_s1 + $0x94] ss:$8 sps:$4 sm:$0xff]  }
 0x3c4   : > { %2053 = vperm.xlu0 %3795, %v1955_v55   ;;  %3420 = vmatpush3.bf16.msra.mxu1 %v3856_v16  ;;  %v3833_v55 = vld [vmem:[%s4907_s1 + $0xc4] ss:$8 sps:$4 sm:$0xff]  }
 0x3c5   : > { %2058 = vperm.xlu1 %3796, %v1956_v56   ;;  %v3859_v56 = vld [vmem:[%s4218_s12 + $0x78] sm:$0xff]  }
 0x3c8   : > { %2063 = vperm.xlu0 %3795, %v1957_v44   ;;  %v3860_v44 = vld [vmem:[%s4218_s12 + $0x38] sm:$0xff]  }
 0x3c9   : > { %1819 = vmatmul.mubr.bf16.gmra.mrb[4].mxu0 %v3802_v51  ;;  %2068 = vperm.xlu1 %3796, %v1958_v59   ;;  %v3830_v51 = vld [vmem:[%s4907_s1 + $0xb4] ss:$8 sps:$4 sm:$0xff]   ;;  %v3838_v59 = vld [vmem:[%s4907_s1 + $0xd0] ss:$8 sps:$4 sm:$0xff]  }
 0x3ca   : > { %1826 = vmatprep.mubr.bf16.mxu0 %v3803_v52  ;;  %v3857_v52 = vld [vmem:[%s4218_s12 + $0x70] sm:$0xff]  }
 0x3cb   : > { %3421 = vmatprep.subr.bf16.mxu1 %v3857_v52 }
 0x3cc   : > { %2073 = vperm.xlu0 %3795, %v1959_v62   ;;  %3422 = vmatpush3.bf16.msra.mxu1 %v3858_v54  ;;  %v3842_v62 = vld [vmem:[%s4907_s1 + $0xf4] ss:$8 sps:$4 sm:$0xff]  }
 0x3cd   : > { %2078 = vperm.xlu1 %3796, %v1960_v63   ;;  %3423 = vmatprep.subr.bf16.mxu1 %v3859_v56  ;;  %v3844_v63 = vld [vmem:[%s4907_s1 + $0xf0] ss:$8 sps:$4 sm:$0xff]  }
 0x3d0   : > { %2083 = vperm.xlu0 %3795, %v1961_v17   ;;  %3424 = vmatpush3.bf16.msra.mxu1 %v3860_v44 }
 0x3d1   : > { %1827 = vmatmul.mubr.bf16.gmra.mrb[8].mxu0 %v3805_v24  ;;  %2088 = vperm.xlu1 %3796, %v1962_v37   ;;  %v3835_v24 = vld [vmem:[%s4907_s1 + $0xc0] ss:$8 sps:$4 sm:$0xff]  }
 0x3d2   : > { %1834 = vmatprep.mubr.bf16.mxu0 %v3806_v58  ;;  %v3836_v58 = vld [vmem:[%s4907_s1 + $0xd4] ss:$8 sps:$4 sm:$0xff]  }
 0x3d4   : > { %2093 = vperm.xlu0 %3795, %v1963_v8  }
 0x3d5   : > { %2098 = vperm.xlu1 %3796, %v1964_v9  }
 0x3d8   : > { %2103 = vperm.xlu0 %3795, %v1965_v34  }
 0x3d9   : > { %1835 = vmatmul.mubr.bf16.gmra.mrb[12].mxu0 %v3808_v3  ;;  %2108 = vperm.xlu1 %3796, %v1966_v28  }
 0x3da   : > { %1842 = vmatprep.mubr.bf16.mxu0 %v3809_v27 }
 0x3dc   : > { %2113 = vperm.xlu0 %3795, %v1967_v11  }
 0x3dd   : > { %2118 = vperm.xlu1 %3796, %v1968_v41  }
 0x3e0   : > { %2123 = vperm.xlu0 %3795, %v1969_v18  }
 0x3e1   : > { %1843 = vmatmul.mubr.bf16.gmra.mrb[16].mxu0 %v3811_v40  ;;  %2128 = vperm.xlu1 %3796, %v1970_v36  }
 0x3e2   : > { %1850 = vmatprep.mubr.bf16.mxu0 %v3812_v57 }
 0x3e9   : > { %1851 = vmatmul.mubr.bf16.gmra.mrb[20].mxu0 %v3814_v22 }
 0x3ea   : > { %1858 = vmatprep.mubr.bf16.mxu0 %v3815_v29 }
 0x3f1   : > { %1859 = vmatmul.mubr.bf16.gmra.mrb[24].mxu0 %v3817_v35 }
 0x3f2   : > { %1866 = vmatprep.mubr.bf16.mxu0 %v3818_v42 }
 0x3f9   : > { %1867 = vmatmul.mubr.bf16.gmra.mrb[28].mxu0 %v3820_v25 }
 0x3fa   : > { %1874 = vmatprep.mubr.bf16.mxu0 %v3821_v46 }
 0x401   : > { %1875 = vmatmul.mubr.bf16.gmra.mrb[32].mxu0 %v3823_v47 }
 0x402   : > { %1882 = vmatprep.mubr.bf16.mxu0 %v3824_v48 }
 0x409   : > { %1883 = vmatmul.mubr.bf16.gmra.mrb[36].mxu0 %v3826_v21 }
 0x40a   : > { %1890 = vmatprep.mubr.bf16.mxu0 %v3827_v49 }
 0x411   : > { %1891 = vmatmul.mubr.bf16.gmra.mrb[40].mxu0 %v3829_v50 }
 0x412   : > { %1898 = vmatprep.mubr.bf16.mxu0 %v3830_v51 }
 0x419   : > { %1899 = vmatmul.mubr.bf16.gmra.mrb[44].mxu0 %v3832_v53 }
 0x41a   : > { %1906 = vmatprep.mubr.bf16.mxu0 %v3833_v55 }
 0x421   : > { %1907 = vmatmul.mubr.bf16.gmra.mrb[48].mxu0 %v3835_v24 }
 0x422   : > { %1914 = vmatprep.mubr.bf16.mxu0 %v3836_v58 }
 0x423   : > { %v1974_v0 = vpop.permute.xlu0 %1973 }
 0x424   : > { %v1984_v6 = vpop.permute.xlu1 %1983 }
 0x427   : > { %v1979_v5 = vpop.permute.xlu0 %1978 }
 0x428   : > { %v1989_v11 = vpop.permute.xlu1 %1988 }
 0x429   : > { %1915 = vmatmul.mubr.bf16.gmra.mrb[52].mxu0 %v3838_v59 }
 0x42a   : > { %1922 = vmatprep.mubr.bf16.mxu0 %v3839_v60 }
 0x42b   : > { %v1994_v25 = vpop.permute.xlu0 %1993 }
 0x42c   : > { %v1999_v46 = vpop.permute.xlu1 %1998 }
 0x42f   : > { %v2004_v54 = vpop.permute.xlu0 %2003 }
 0x430   : > { %v2009_v55 = vpop.permute.xlu1 %2008 }
 0x431   : > { %1923 = vmatmul.mubr.bf16.gmra.mrb[56].mxu0 %v3841_v33 }
 0x432   : > { %1930 = vmatprep.mubr.bf16.mxu0 %v3842_v62 }
 0x439   : > { %1931 = vmatmul.mubr.bf16.gmra.mrb[60].mxu0 %v3844_v63  ;;  %v2014_v63 = vpop.permute.xlu0 %2013 }
 0x494   : > { %v3313_v2 = vpop.f32.mrb[0].mxu0 }
 0x495   : > { %v3314_v17 = vpop.f32.mrb[1].mxu0 }
 0x496   : > { %v3315_v3 = vadd.f32 %v3314_v17, %v3313_v2  ;;  %v3316_v27 = vpop.f32.mrb[2].mxu0 }
 0x497   : > { %v3317_v37 = vpop.f32.mrb[3].mxu0 }
 0x498   : > { %v3318_v4 = vadd.f32 %v3317_v37, %v3316_v27  ;;  %v2131_v8 = vmul.f32 %v3315_v3, %v1974_v0  ;;  %v2019_v0 = vpop.permute.xlu1 %2018 }
 0x49a   : > { %v2132_v9 = vmul.f32 %v3318_v4, %v1979_v5 }
 0x49c   : > { %v3319_v15 = vpop.f32.mrb[4].mxu0  ;;  %v2183_v34 = vpack.c.bf16 %v2132_v9, %v2131_v8  ;;  %v2024_v9 = vpop.permute.xlu0 %2023 }
 0x49d   : > { %v3320_v40 = vpop.f32.mrb[5].mxu0 }
 0x49e   : > { %v3321_v57 = vadd.f32 %v3320_v40, %v3319_v15  ;;  %v3322_v28 = vpop.f32.mrb[6].mxu0  ;;  %2367 = vmatmul.mubr.bf16.vlgmr.msra.gmra.mrb[0].mxu1 %v2183_v34 }
 0x49f   : > { %v3323_v10 = vpop.f32.mrb[7].mxu0  ;;  %2374 = vmatprep.mubr.bf16.mxu1 %v4571_v61 }
 0x4a0   : > { %v3324_v43 = vadd.f32 %v3323_v10, %v3322_v28  ;;  %v2133_v41 = vmul.f32 %v3321_v57, %v1984_v6  ;;  %v2029_v6 = vpop.permute.xlu1 %2028 }
 0x4a2   : > { %v2134_v14 = vmul.f32 %v3324_v43, %v1989_v11 }
 0x4a4   : > { %v3325_v16 = vpop.f32.mrb[8].mxu0  ;;  %v2184_v18 = vpack.c.bf16 %v2134_v14, %v2133_v41  ;;  %v2034_v41 = vpop.permute.xlu0 %2033 }
 0x4a5   : > { %v3326_v22 = vpop.f32.mrb[9].mxu0  ;;  %v2039_v14 = vpop.permute.xlu1 %2038 }
 0x4a6   : > { %v3327_v29 = vadd.f32 %v3326_v22, %v3325_v16  ;;  %v3328_v36 = vpop.f32.mrb[10].mxu0  ;;  %2375 = vmatmul.mubr.bf16.gmra.mrb[4].mxu1 %v2184_v18 }
 0x4a7   : > { %v3329_v35 = vpop.f32.mrb[11].mxu0  ;;  %2382 = vmatprep.mubr.bf16.mxu1 %v4580_v19 }
 0x4a8   : > { %v3330_v42 = vadd.f32 %v3329_v35, %v3328_v36  ;;  %v2135_v47 = vmul.f32 %v3327_v29, %v1994_v25 }
 0x4aa   : > { %v2136_v48 = vmul.f32 %v3330_v42, %v1999_v46  ;;  %v2044_v46 = vpop.permute.xlu0 %2043 }
 0x4ac   : > { %v3331_v21 = vpop.f32.mrb[12].mxu0  ;;  %v2185_v61 = vpack.c.bf16 %v2136_v48, %v2135_v47  ;;  %v2049_v47 = vpop.permute.xlu1 %2048 }
 0x4ad   : > { %v3332_v49 = vpop.f32.mrb[13].mxu0 }
 0x4ae   : > { %v3333_v50 = vadd.f32 %v3332_v49, %v3331_v21  ;;  %v3334_v51 = vpop.f32.mrb[14].mxu0  ;;  %2383 = vmatmul.mubr.bf16.gmra.mrb[8].mxu1 %v2185_v61 }
 0x4af   : > { %v3335_v52 = vpop.f32.mrb[15].mxu0  ;;  %2390 = vmatprep.mubr.bf16.mxu1 %v4587_v13 }
 0x4b0   : > { %v3336_v53 = vadd.f32 %v3335_v52, %v3334_v51  ;;  %v2137_v56 = vmul.f32 %v3333_v50, %v2004_v54  ;;  %v2054_v54 = vpop.permute.xlu0 %2053 }
 0x4b2   : > { %v2138_v44 = vmul.f32 %v3336_v53, %v2009_v55  ;;  %v2059_v55 = vpop.permute.xlu1 %2058 }
 0x4b4   : > { %v3337_v19 = vpop.f32.mrb[16].mxu0  ;;  %v2186_v24 = vpack.c.bf16 %v2138_v44, %v2137_v56 }
 0x4b5   : > { %v3338_v58 = vpop.f32.mrb[17].mxu0 }
 0x4b6   : > { %v3339_v59 = vadd.f32 %v3338_v58, %v3337_v19  ;;  %v3340_v60 = vpop.f32.mrb[18].mxu0  ;;  %2391 = vmatmul.mubr.bf16.gmra.mrb[12].mxu1 %v2186_v24 }
 0x4b7   : > { %v3341_v33 = vpop.f32.mrb[19].mxu0  ;;  %2398 = vmatprep.mubr.bf16.mxu1 %v4596_v20 }
 0x4b8   : > { %v3342_v62 = vadd.f32 %v3341_v33, %v3340_v60  ;;  %v2139_v2 = vmul.f32 %v3339_v59, %v2014_v63  ;;  %v2069_v63 = vpop.permute.xlu1 %2068 }
 0x4ba   : > { %v2140_v17 = vmul.f32 %v3342_v62, %v2019_v0  ;;  %v2064_v62 = vpop.permute.xlu0 %2063 }
 0x4bc   : > { %v3343_v13 = vpop.f32.mrb[20].mxu0  ;;  %v2187_v3 = vpack.c.bf16 %v2140_v17, %v2139_v2 }
 0x4bd   : > { %v3344_v27 = vpop.f32.mrb[21].mxu0 }
 0x4be   : > { %v3345_v37 = vadd.f32 %v3344_v27, %v3343_v13  ;;  %v3346_v4 = vpop.f32.mrb[22].mxu0  ;;  %2399 = vmatmul.mubr.bf16.gmra.mrb[16].mxu1 %v2187_v3 }
 0x4bf   : > { %v3347_v5 = vpop.f32.mrb[23].mxu0  ;;  %2406 = vmatprep.mubr.bf16.mxu1 %v4604_v30 }
 0x4c0   : > { %v3348_v8 = vadd.f32 %v3347_v5, %v3346_v4  ;;  %v2141_v15 = vmul.f32 %v3345_v37, %v2024_v9  ;;  %v2074_v5 = vpop.permute.xlu0 %2073 }
 0x4c2   : > { %v2142_v34 = vmul.f32 %v3348_v8, %v2029_v6  ;;  %v2079_v8 = vpop.permute.xlu1 %2078 }
 0x4c4   : > { %v3349_v20 = vpop.f32.mrb[24].mxu0  ;;  %v2188_v40 = vpack.c.bf16 %v2142_v34, %v2141_v15 }
 0x4c5   : > { %v3350_v57 = vpop.f32.mrb[25].mxu0 }
 0x4c6   : > { %v3351_v28 = vadd.f32 %v3350_v57, %v3349_v20  ;;  %v3352_v10 = vpop.f32.mrb[26].mxu0  ;;  %2407 = vmatmul.mubr.bf16.gmra.mrb[20].mxu1 %v2188_v40 }
 0x4c7   : > { %v3353_v43 = vpop.f32.mrb[27].mxu0  ;;  %2414 = vmatprep.mubr.bf16.mxu1 %v4612_v38 }
 0x4c8   : > { %v3354_v11 = vadd.f32 %v3353_v43, %v3352_v10  ;;  %v2143_v16 = vmul.f32 %v3351_v28, %v2034_v41  ;;  %v2084_v10 = vpop.permute.xlu0 %2083  ;;  %v2089_v43 = vpop.permute.xlu1 %2088 }
 0x4ca   : > { %v2144_v18 = vmul.f32 %v3354_v11, %v2039_v14 }
 0x4cc   : > { %v3355_v30 = vpop.f32.mrb[28].mxu0  ;;  %v2189_v22 = vpack.c.bf16 %v2144_v18, %v2143_v16 }
 0x4cd   : > { %v3356_v29 = vpop.f32.mrb[29].mxu0 }
 0x4ce   : > { %v3357_v36 = vadd.f32 %v3356_v29, %v3355_v30  ;;  %v3358_v35 = vpop.f32.mrb[30].mxu0  ;;  %2415 = vmatmul.mubr.bf16.gmra.mrb[24].mxu1 %v2189_v22 }
 0x4cf   : > { %v3359_v42 = vpop.f32.mrb[31].mxu0  ;;  %2422 = vmatprep.mubr.bf16.mxu1 %v4620_v45 }
 0x4d0   : > { %v3360_v25 = vadd.f32 %v3359_v42, %v3358_v35  ;;  %v2145_v48 = vmul.f32 %v3357_v36, %v2044_v46  ;;  %v2094_v36 = vpop.permute.xlu0 %2093  ;;  %v2099_v35 = vpop.permute.xlu1 %2098 }
 0x4d2   : > { %v2146_v21 = vmul.f32 %v3360_v25, %v2049_v47 }
 0x4d4   : > { %v3361_v38 = vpop.f32.mrb[32].mxu0  ;;  %v2190_v61 = vpack.c.bf16 %v2146_v21, %v2145_v48 }
 0x4d5   : > { %v3362_v49 = vpop.f32.mrb[33].mxu0 }
 0x4d6   : > { %v3363_v50 = vadd.f32 %v3362_v49, %v3361_v38  ;;  %v3364_v51 = vpop.f32.mrb[34].mxu0  ;;  %2423 = vmatmul.mubr.bf16.gmra.mrb[28].mxu1 %v2190_v61  ;;  %v2104_v49 = vpop.permute.xlu0 %2103 }
 0x4d7   : > { %v3365_v52 = vpop.f32.mrb[35].mxu0  ;;  %2430 = vmatprep.mubr.bf16.mxu1 %v4565_v1 }
 0x4d8   : > { %v3366_v53 = vadd.f32 %v3365_v52, %v3364_v51  ;;  %v2147_v56 = vmul.f32 %v3363_v50, %v2054_v54  ;;  %v2109_v50 = vpop.permute.xlu1 %2108 }
 0x4da   : > { %v2148_v44 = vmul.f32 %v3366_v53, %v2059_v55 }
 0x4dc   : > { %v3367_v45 = vpop.f32.mrb[36].mxu0  ;;  %v2191_v19 = vpack.c.bf16 %v2148_v44, %v2147_v56 }
 0x4dd   : > { %v3368_v24 = vpop.f32.mrb[37].mxu0 }
 0x4de   : > { %v3369_v58 = vadd.f32 %v3368_v24, %v3367_v45  ;;  %v3370_v59 = vpop.f32.mrb[38].mxu0  ;;  %2431 = vmatmul.mubr.bf16.gmra.mrb[32].mxu1 %v2191_v19  ;;  %v2114_v19 = vpop.permute.xlu0 %2113 }
 0x4df   : > { %v3371_v60 = vpop.f32.mrb[39].mxu0  ;;  %2438 = vmatprep.mubr.bf16.mxu1 %v4567_v23  ;;  %v2119_v24 = vpop.permute.xlu1 %2118 }
 0x4e0   : > { %v3372_v33 = vadd.f32 %v3371_v60, %v3370_v59  ;;  %v2149_v0 = vmul.f32 %v3369_v58, %v2064_v62 }
 0x4e2   : > { %v2150_v2 = vmul.f32 %v3372_v33, %v2069_v63 }
 0x4e4   : > { %v3373_v1 = vpop.f32.mrb[40].mxu0  ;;  %v2192_v17 = vpack.c.bf16 %v2150_v2, %v2149_v0 }
 0x4e5   : > { %v3374_v13 = vpop.f32.mrb[41].mxu0 }
 0x4e6   : > { %v3375_v3 = vadd.f32 %v3374_v13, %v3373_v1  ;;  %v3376_v27 = vpop.f32.mrb[42].mxu0  ;;  %2439 = vmatmul.mubr.bf16.gmra.mrb[36].mxu1 %v2192_v17  ;;  %v2124_v1 = vpop.permute.xlu0 %2123 }
 0x4e7   : > { %v3377_v37 = vpop.f32.mrb[43].mxu0  ;;  %2446 = vmatprep.mubr.bf16.mxu1 %v4573_v7  ;;  %v2129_v17 = vpop.permute.xlu1 %2128 }
 0x4e8   : > { %v3378_v4 = vadd.f32 %v3377_v37, %v3376_v27  ;;  %v2151_v9 = vmul.f32 %v3375_v3, %v2074_v5  ;;  %v4770_v37 = vld [vmem:[%s4196_s16] ss:$0 sm:$0xff] }
 0x4ea   : > { %v2152_v6 = vmul.f32 %v3378_v4, %v2079_v8 }
 0x4ec   : > { %v3379_v23 = vpop.f32.mrb[44].mxu0  ;;  %v2193_v15 = vpack.c.bf16 %v2152_v6, %v2151_v9 }
 0x4ed   : > { %v3380_v34 = vpop.f32.mrb[45].mxu0 }
 0x4ee   : > { %v3381_v20 = vadd.f32 %v3380_v34, %v3379_v23  ;;  %v3382_v40 = vpop.f32.mrb[46].mxu0  ;;  %2447 = vmatmul.mubr.bf16.gmra.mrb[40].mxu1 %v2193_v15 }
 0x4ef   : > { %v3383_v57 = vpop.f32.mrb[47].mxu0  ;;  %2454 = vmatprep.mubr.bf16.mxu1 %v4582_v12 }
 0x4f0   : > { %v3384_v28 = vadd.f32 %v3383_v57, %v3382_v40  ;;  %v2153_v11 = vmul.f32 %v3381_v20, %v2084_v10 }
 0x4f2   : > { %v2154_v41 = vmul.f32 %v3384_v28, %v2089_v43 }
 0x4f4   : > { %v3385_v7 = vpop.f32.mrb[48].mxu0  ;;  %v2194_v14 = vpack.c.bf16 %v2154_v41, %v2153_v11 }
 0x4f5   : > { %v3386_v16 = vpop.f32.mrb[49].mxu0 }
 0x4f6   : > { %v3387_v18 = vadd.f32 %v3386_v16, %v3385_v7  ;;  %v3388_v30 = vpop.f32.mrb[50].mxu0  ;;  %2455 = vmatmul.mubr.bf16.gmra.mrb[44].mxu1 %v2194_v14 }
 0x4f7   : > { %v3389_v22 = vpop.f32.mrb[51].mxu0  ;;  %2462 = vmatprep.mubr.bf16.mxu1 %v4589_v32 }
 0x4f8   : > { %v3390_v29 = vadd.f32 %v3389_v22, %v3388_v30  ;;  %v2155_v42 = vmul.f32 %v3387_v18, %v2094_v36 }
 0x4fa   : > { %v2156_v25 = vmul.f32 %v3390_v29, %v2099_v35 }
 0x4fc   : > { %v3391_v12 = vpop.f32.mrb[52].mxu0  ;;  %v2195_v46 = vpack.c.bf16 %v2156_v25, %v2155_v42 }
 0x4fd   : > { %v3392_v47 = vpop.f32.mrb[53].mxu0 }
 0x4fe   : > { %v3393_v48 = vadd.f32 %v3392_v47, %v3391_v12  ;;  %v3394_v21 = vpop.f32.mrb[54].mxu0  ;;  %2463 = vmatmul.mubr.bf16.gmra.mrb[48].mxu1 %v2195_v46 }
 0x4ff   : > { %v3395_v38 = vpop.f32.mrb[55].mxu0  ;;  %2470 = vmatprep.mubr.bf16.mxu1 %v4598_v26 }
 0x500   : > { %v3396_v61 = vadd.f32 %v3395_v38, %v3394_v21  ;;  %v2157_v51 = vmul.f32 %v3393_v48, %v2104_v49 }
 0x502   : > { %v2158_v52 = vmul.f32 %v3396_v61, %v2109_v50 }
 0x504   : > { %v3397_v32 = vpop.f32.mrb[56].mxu0  ;;  %v2196_v53 = vpack.c.bf16 %v2158_v52, %v2157_v51 }
 0x505   : > { %v3398_v54 = vpop.f32.mrb[57].mxu0 }
 0x506   : > { %v3399_v55 = vadd.f32 %v3398_v54, %v3397_v32  ;;  %v3400_v56 = vpop.f32.mrb[58].mxu0  ;;  %2471 = vmatmul.mubr.bf16.gmra.mrb[52].mxu1 %v2196_v53 }
 0x507   : > { %v3401_v44 = vpop.f32.mrb[59].mxu0  ;;  %2478 = vmatprep.mubr.bf16.mxu1 %v4606_v31 }
 0x508   : > { %v3402_v45 = vadd.f32 %v3401_v44, %v3400_v56  ;;  %v2159_v58 = vmul.f32 %v3399_v55, %v2114_v19 }
 0x50a   : > { %v2160_v59 = vmul.f32 %v3402_v45, %v2119_v24 }
 0x50c   : > { %v3403_v26 = vpop.f32.mrb[60].mxu0  ;;  %v2197_v60 = vpack.c.bf16 %v2160_v59, %v2159_v58 }
 0x50d   : > { %v3404_v33 = vpop.f32.mrb[61].mxu0 }
 0x50e   : > { %v3405_v62 = vadd.f32 %v3404_v33, %v3403_v26  ;;  %v3406_v63 = vpop.f32.mrb[62].mxu0  ;;  %2479 = vmatmul.mubr.bf16.gmra.mrb[56].mxu1 %v2197_v60 }
 0x50f   : > { %v3407_v0 = vpop.f32.mrb[63].mxu0  ;;  %2486 = vmatprep.mubr.bf16.mxu1 %v4614_v39 }
 0x510   : > { %v3408_v2 = vadd.f32 %v3407_v0, %v3406_v63  ;;  %v2161_v13 = vmul.f32 %v3405_v62, %v2124_v1 }
 0x512   : > { %v2162_v31 = vmul.f32 %v3408_v2, %v2129_v17 }
 0x514   : > { %v2198_v3 = vpack.c.bf16 %v2162_v31, %v2161_v13 }
 0x516   : > { %2487 = vmatmul.mubr.bf16.gmra.mrb[60].mxu1 %v2198_v3 }
 0x571   : > { %v3425_v27 = vpop.f32.mrb[0].mxu1 }
 0x572   : > { %v3426_v4 = vpop.f32.mrb[1].mxu1 }
 0x573   : > { %v3427_v5 = vadd.f32 %v3426_v4, %v3425_v27  ;;  %v3428_v8 = vpop.f32.mrb[2].mxu1 }
 0x574   : > { %v3429_v9 = vpop.f32.mrb[3].mxu1 }
 0x575   : > { %v2369_v6 = vadd.f32 %v3427_v5, %v4770_v37  ;;  %v3430_v23 = vadd.f32 %v3429_v9, %v3428_v8 }
 0x577   : > { %v2372_v15 = vadd.f32 %v3430_v23, %v4770_v37  ;;  %v2495_v39 = vmax.f32 %v2369_v6, 0.0 }
 0x579   : > { %v2496_v34 = vmax.f32 %v2372_v15, 0.0  ;;  %v3431_v20 = vpop.f32.mrb[4].mxu1 }
 0x57a   : > { %v3432_v40 = vpop.f32.mrb[5].mxu1 }
 0x57b   : > { %v4774_v57 = vpack.c.bf16 %v2496_v34, %v2495_v39  ;;  %v3433_v28 = vadd.f32 %v3432_v40, %v3431_v20  ;;  %v3434_v10 = vpop.f32.mrb[6].mxu1 }
 0x57c   : > { %v3435_v43 = vpop.f32.mrb[7].mxu1 }
 0x57d   : > { %2545 = vst [vmem:[#allocation2] sm:$0xff] %v4774_v57  ;;  %v2377_v11 = vadd.f32 %v3433_v28, %v4770_v37  ;;  %v3436_v41 = vadd.f32 %v3435_v43, %v3434_v10 }
 0x57f   : > { %v2380_v7 = vadd.f32 %v3436_v41, %v4770_v37  ;;  %v2497_v14 = vmax.f32 %v2377_v11, 0.0 }
 0x581   : > { %v2498_v16 = vmax.f32 %v2380_v7, 0.0  ;;  %v3437_v18 = vpop.f32.mrb[8].mxu1 }
 0x582   : > { %v3438_v30 = vpop.f32.mrb[9].mxu1 }
 0x583   : > { %v4779_v22 = vpack.c.bf16 %v2498_v16, %v2497_v14  ;;  %v3439_v29 = vadd.f32 %v3438_v30, %v3437_v18  ;;  %v3440_v36 = vpop.f32.mrb[10].mxu1 }
 0x584   : > { %v3441_v35 = vpop.f32.mrb[11].mxu1 }
 0x585   : > { %2546 = vst [vmem:[#allocation2 + $0x8] sm:$0xff] %v4779_v22  ;;  %v2385_v42 = vadd.f32 %v3439_v29, %v4770_v37  ;;  %v3442_v25 = vadd.f32 %v3441_v35, %v3440_v36 }
 0x587   : > { %v2388_v12 = vadd.f32 %v3442_v25, %v4770_v37  ;;  %v2499_v46 = vmax.f32 %v2385_v42, 0.0 }
 0x589   : > { %v2500_v47 = vmax.f32 %v2388_v12, 0.0  ;;  %v3443_v48 = vpop.f32.mrb[12].mxu1 }
 0x58a   : > { %v3444_v21 = vpop.f32.mrb[13].mxu1 }
 0x58b   : > { %v4784_v38 = vpack.c.bf16 %v2500_v47, %v2499_v46  ;;  %v3445_v61 = vadd.f32 %v3444_v21, %v3443_v48  ;;  %v3446_v49 = vpop.f32.mrb[14].mxu1 }
 0x58c   : > { %v3447_v50 = vpop.f32.mrb[15].mxu1 }
 0x58d   : > { %2547 = vst [vmem:[#allocation2 + $0x10] sm:$0xff] %v4784_v38  ;;  %v2393_v51 = vadd.f32 %v3445_v61, %v4770_v37  ;;  %v3448_v52 = vadd.f32 %v3447_v50, %v3446_v49 }
 0x58f   : > { %v2396_v32 = vadd.f32 %v3448_v52, %v4770_v37  ;;  %v2501_v53 = vmax.f32 %v2393_v51, 0.0 }
 0x591   : > { %v2502_v54 = vmax.f32 %v2396_v32, 0.0  ;;  %v3449_v55 = vpop.f32.mrb[16].mxu1 }
 0x592   : > { %v3450_v56 = vpop.f32.mrb[17].mxu1 }
 0x593   : > { %v4789_v44 = vpack.c.bf16 %v2502_v54, %v2501_v53  ;;  %v3451_v45 = vadd.f32 %v3450_v56, %v3449_v55  ;;  %v3452_v19 = vpop.f32.mrb[18].mxu1 }
 0x594   : > { %v3453_v24 = vpop.f32.mrb[19].mxu1 }
 0x595   : > { %2548 = vst [vmem:[#allocation2 + $0x18] sm:$0xff] %v4789_v44  ;;  %v2401_v58 = vadd.f32 %v3451_v45, %v4770_v37  ;;  %v3454_v59 = vadd.f32 %v3453_v24, %v3452_v19 }
 0x597   : > { %v2404_v26 = vadd.f32 %v3454_v59, %v4770_v37  ;;  %v2503_v60 = vmax.f32 %v2401_v58, 0.0 }
 0x599   : > { %v2504_v33 = vmax.f32 %v2404_v26, 0.0  ;;  %v3455_v62 = vpop.f32.mrb[20].mxu1 }
 0x59a   : > { %v3456_v63 = vpop.f32.mrb[21].mxu1 }
 0x59b   : > { %v4794_v0 = vpack.c.bf16 %v2504_v33, %v2503_v60  ;;  %v3457_v2 = vadd.f32 %v3456_v63, %v3455_v62  ;;  %v3458_v1 = vpop.f32.mrb[22].mxu1 }
 0x59c   : > { %v3459_v17 = vpop.f32.mrb[23].mxu1 }
 0x59d   : > { %2549 = vst [vmem:[#allocation2 + $0x20] sm:$0xff] %v4794_v0  ;;  %v2409_v13 = vadd.f32 %v3457_v2, %v4770_v37  ;;  %v3460_v31 = vadd.f32 %v3459_v17, %v3458_v1 }
 0x59f   : > { %v2412_v3 = vadd.f32 %v3460_v31, %v4770_v37  ;;  %v2505_v27 = vmax.f32 %v2409_v13, 0.0 }
 0x5a1   : > { %v2506_v4 = vmax.f32 %v2412_v3, 0.0  ;;  %v3461_v5 = vpop.f32.mrb[24].mxu1 }
 0x5a2   : > { %v3462_v8 = vpop.f32.mrb[25].mxu1 }
 0x5a3   : > { %v4799_v9 = vpack.c.bf16 %v2506_v4, %v2505_v27  ;;  %v3463_v6 = vadd.f32 %v3462_v8, %v3461_v5  ;;  %v3464_v23 = vpop.f32.mrb[26].mxu1 }
 0x5a4   : > { %v3465_v15 = vpop.f32.mrb[27].mxu1 }
 0x5a5   : > { %2550 = vst [vmem:[#allocation2 + $0x28] sm:$0xff] %v4799_v9  ;;  %v2417_v39 = vadd.f32 %v3463_v6, %v4770_v37  ;;  %v3466_v34 = vadd.f32 %v3465_v15, %v3464_v23 }
 0x5a7   : > { %v2420_v20 = vadd.f32 %v3466_v34, %v4770_v37  ;;  %v2507_v40 = vmax.f32 %v2417_v39, 0.0 }
 0x5a9   : > { %v2508_v28 = vmax.f32 %v2420_v20, 0.0  ;;  %v3467_v10 = vpop.f32.mrb[28].mxu1 }
 0x5aa   : > { %v3468_v43 = vpop.f32.mrb[29].mxu1 }
 0x5ab   : > { %v4804_v11 = vpack.c.bf16 %v2508_v28, %v2507_v40  ;;  %v3469_v41 = vadd.f32 %v3468_v43, %v3467_v10  ;;  %v3470_v7 = vpop.f32.mrb[30].mxu1 }
 0x5ac   : > { %v3471_v14 = vpop.f32.mrb[31].mxu1 }
 0x5ad   : > { %2551 = vst [vmem:[#allocation2 + $0x30] sm:$0xff] %v4804_v11  ;;  %v2425_v16 = vadd.f32 %v3469_v41, %v4770_v37  ;;  %v3472_v18 = vadd.f32 %v3471_v14, %v3470_v7 }
 0x5af   : > { %v2428_v30 = vadd.f32 %v3472_v18, %v4770_v37  ;;  %v2509_v29 = vmax.f32 %v2425_v16, 0.0 }
 0x5b1   : > { %v2510_v36 = vmax.f32 %v2428_v30, 0.0  ;;  %v3473_v35 = vpop.f32.mrb[32].mxu1 }
 0x5b2   : > { %v3474_v42 = vpop.f32.mrb[33].mxu1 }
 0x5b3   : > { %v4809_v25 = vpack.c.bf16 %v2510_v36, %v2509_v29  ;;  %v3475_v12 = vadd.f32 %v3474_v42, %v3473_v35  ;;  %v3476_v46 = vpop.f32.mrb[34].mxu1 }
 0x5b4   : > { %v3477_v47 = vpop.f32.mrb[35].mxu1 }
 0x5b5   : > { %2552 = vst [vmem:[#allocation2 + $0x38] sm:$0xff] %v4809_v25  ;;  %v2433_v48 = vadd.f32 %v3475_v12, %v4770_v37  ;;  %v3478_v21 = vadd.f32 %v3477_v47, %v3476_v46 }
 0x5b7   : > { %v2436_v61 = vadd.f32 %v3478_v21, %v4770_v37  ;;  %v2511_v49 = vmax.f32 %v2433_v48, 0.0 }
 0x5b9   : > { %v2512_v50 = vmax.f32 %v2436_v61, 0.0  ;;  %v3479_v51 = vpop.f32.mrb[36].mxu1 }
 0x5ba   : > { %v3480_v52 = vpop.f32.mrb[37].mxu1 }
 0x5bb   : > { %v4814_v32 = vpack.c.bf16 %v2512_v50, %v2511_v49  ;;  %v3481_v53 = vadd.f32 %v3480_v52, %v3479_v51  ;;  %v3482_v54 = vpop.f32.mrb[38].mxu1 }
 0x5bc   : > { %v3483_v55 = vpop.f32.mrb[39].mxu1 }
 0x5bd   : > { %2553 = vst [vmem:[#allocation2 + $0x40] sm:$0xff] %v4814_v32  ;;  %v2441_v56 = vadd.f32 %v3481_v53, %v4770_v37  ;;  %v3484_v45 = vadd.f32 %v3483_v55, %v3482_v54  ;;  %3618 = vmatprep.subr.bf16.mxu0 (!%p3018_p13), %v4814_v32 }
 0x5be   : > { %3620 = vmatpush3.bf16.msra.mxu0 (!%p3018_p13), %v4774_v57 }
 0x5bf   : > { %v2444_v19 = vadd.f32 %v3484_v45, %v4770_v37  ;;  %v2513_v24 = vmax.f32 %v2441_v56, 0.0 }
 0x5c1   : > { %v2514_v58 = vmax.f32 %v2444_v19, 0.0  ;;  %v3485_v59 = vpop.f32.mrb[40].mxu1 }
 0x5c2   : > { %v3486_v26 = vpop.f32.mrb[41].mxu1 }
 0x5c3   : > { %v4819_v60 = vpack.c.bf16 %v2514_v58, %v2513_v24  ;;  %v3487_v33 = vadd.f32 %v3486_v26, %v3485_v59  ;;  %v3488_v62 = vpop.f32.mrb[42].mxu1 }
 0x5c4   : > { %v3489_v63 = vpop.f32.mrb[43].mxu1 }
 0x5c5   : > { %2554 = vst [vmem:[#allocation2 + $0x48] sm:$0xff] %v4819_v60  ;;  %v2449_v2 = vadd.f32 %v3487_v33, %v4770_v37  ;;  %v3490_v1 = vadd.f32 %v3489_v63, %v3488_v62  ;;  %3622 = vmatprep.subr.bf16.mxu0 (!%p3018_p13), %v4819_v60 }
 0x5c6   : > { %3624 = vmatpush3.bf16.msra.mxu0 (!%p3018_p13), %v4779_v22  ;;  %v2564_v22 = vld [vmem:[#allocation4] sm:$0xff] (!%p3018_p13) }
 0x5c7   : > { %v2452_v17 = vadd.f32 %v3490_v1, %v4770_v37  ;;  %v2515_v13 = vmax.f32 %v2449_v2, 0.0 }
 0x5c9   : > { %v2516_v31 = vmax.f32 %v2452_v17, 0.0  ;;  %v3491_v3 = vpop.f32.mrb[44].mxu1 }
 0x5ca   : > { %v3492_v27 = vpop.f32.mrb[45].mxu1 }
 0x5cb   : > { %v4824_v4 = vpack.c.bf16 %v2516_v31, %v2515_v13  ;;  %v3493_v5 = vadd.f32 %v3492_v27, %v3491_v3  ;;  %v3494_v8 = vpop.f32.mrb[46].mxu1 }
 0x5cc   : > { %v3495_v6 = vpop.f32.mrb[47].mxu1 }
 0x5cd   : > { %2555 = vst [vmem:[#allocation2 + $0x50] sm:$0xff] %v4824_v4  ;;  %v2457_v23 = vadd.f32 %v3493_v5, %v4770_v37  ;;  %v3496_v15 = vadd.f32 %v3495_v6, %v3494_v8  ;;  %v2566_v8 = vld [vmem:[%s4909_s3 + $0x8] sm:$0xff] (!%p3018_p13)  ;;  %3626 = vmatprep.subr.bf16.mxu0 (!%p3018_p13), %v4824_v4 }
 0x5ce   : > { %2631 = vmatprep.mubr.f32.mxu0 (!%p3018_p13), %v2566_v8  ;;  %3628 = vmatpush3.bf16.msra.mxu0 (!%p3018_p13), %v4784_v38 }
 0x5cf   : > { %v2460_v39 = vadd.f32 %v3496_v15, %v4770_v37  ;;  %v2517_v34 = vmax.f32 %v2457_v23, 0.0 }
 0x5d1   : > { %v2518_v20 = vmax.f32 %v2460_v39, 0.0  ;;  %v3497_v40 = vpop.f32.mrb[48].mxu1 }
 0x5d2   : > { %v3498_v28 = vpop.f32.mrb[49].mxu1 }
 0x5d3   : > { %v2538_v10 = vpack.c.bf16 %v2518_v20, %v2517_v34  ;;  %v3499_v43 = vadd.f32 %v3498_v28, %v3497_v40  ;;  %v3500_v41 = vpop.f32.mrb[50].mxu1 }
 0x5d4   : > { %v3501_v7 = vpop.f32.mrb[51].mxu1 }
 0x5d5   : > { %2556 = vst [vmem:[#allocation2 + $0x58] sm:$0xff] %v2538_v10  ;;  %v2465_v14 = vadd.f32 %v3499_v43, %v4770_v37  ;;  %v3502_v16 = vadd.f32 %v3501_v7, %v3500_v41  ;;  %3630 = vmatprep.subr.bf16.mxu0 (!%p3018_p13), %v2538_v10 }
 0x5d6   : > { %3632 = vmatpush3.bf16.msra.mxu0 (!%p3018_p13), %v4789_v44 }
 0x5d7   : > { %v2468_v18 = vadd.f32 %v3502_v16, %v4770_v37  ;;  %v2519_v30 = vmax.f32 %v2465_v14, 0.0 }
 0x5d9   : > { %v2520_v29 = vmax.f32 %v2468_v18, 0.0  ;;  %v3503_v36 = vpop.f32.mrb[52].mxu1 }
 0x5da   : > { %v3504_v35 = vpop.f32.mrb[53].mxu1 }
 0x5db   : > { %v2539_v42 = vpack.c.bf16 %v2520_v29, %v2519_v30  ;;  %v3505_v12 = vadd.f32 %v3504_v35, %v3503_v36  ;;  %v3506_v46 = vpop.f32.mrb[54].mxu1 }
 0x5dc   : > { %v3507_v47 = vpop.f32.mrb[55].mxu1 }
 0x5dd   : > { %2557 = vst [vmem:[#allocation2 + $0x60] sm:$0xff] %v2539_v42  ;;  %v2473_v48 = vadd.f32 %v3505_v12, %v4770_v37  ;;  %v3508_v21 = vadd.f32 %v3507_v47, %v3506_v46  ;;  %3634 = vmatprep.subr.bf16.mxu0 (!%p3018_p13), %v2539_v42 }
 0x5de   : > { %3636 = vmatpush3.bf16.msra.mxu0 (!%p3018_p13), %v4794_v0 }
 0x5df   : > { %v2476_v61 = vadd.f32 %v3508_v21, %v4770_v37  ;;  %v2521_v49 = vmax.f32 %v2473_v48, 0.0 }
 0x5e1   : > { %v2522_v50 = vmax.f32 %v2476_v61, 0.0  ;;  %v3509_v51 = vpop.f32.mrb[56].mxu1 }
 0x5e2   : > { %v3510_v52 = vpop.f32.mrb[57].mxu1 }
 0x5e3   : > { %v2540_v53 = vpack.c.bf16 %v2522_v50, %v2521_v49  ;;  %v3511_v54 = vadd.f32 %v3510_v52, %v3509_v51  ;;  %v3512_v55 = vpop.f32.mrb[58].mxu1 }
 0x5e4   : > { %v3513_v56 = vpop.f32.mrb[59].mxu1 }
 0x5e5   : > { %2558 = vst [vmem:[#allocation2 + $0x68] sm:$0xff] %v2540_v53  ;;  %v2481_v45 = vadd.f32 %v3511_v54, %v4770_v37  ;;  %v3514_v19 = vadd.f32 %v3513_v56, %v3512_v55  ;;  %3638 = vmatprep.subr.bf16.mxu0 (!%p3018_p13), %v2540_v53 }
 0x5e6   : > { %3640 = vmatpush3.bf16.msra.mxu0 (!%p3018_p13), %v4799_v9 }
 0x5e7   : > { %v2484_v24 = vadd.f32 %v3514_v19, %v4770_v37  ;;  %v2523_v58 = vmax.f32 %v2481_v45, 0.0 }
 0x5e9   : > { %v2524_v59 = vmax.f32 %v2484_v24, 0.0  ;;  %v3515_v26 = vpop.f32.mrb[60].mxu1 }
 0x5ea   : > { %v3516_v33 = vpop.f32.mrb[61].mxu1 }
 0x5eb   : > { %v2541_v62 = vpack.c.bf16 %v2524_v59, %v2523_v58  ;;  %v3517_v63 = vadd.f32 %v3516_v33, %v3515_v26  ;;  %v3518_v2 = vpop.f32.mrb[62].mxu1 }
 0x5ec   : > { %v3519_v1 = vpop.f32.mrb[63].mxu1 }
 0x5ed   : > { %2559 = vst [vmem:[#allocation2 + $0x70] sm:$0xff] %v2541_v62  ;;  %v2489_v17 = vadd.f32 %v3517_v63, %v4770_v37  ;;  %v3520_v13 = vadd.f32 %v3519_v1, %v3518_v2  ;;  %3642 = vmatprep.subr.bf16.mxu0 (!%p3018_p13), %v2541_v62 }
 0x5ee   : > { %3644 = vmatpush3.bf16.msra.mxu0 (!%p3018_p13), %v4804_v11 }
 0x5ef   : > { %v2492_v31 = vadd.f32 %v3520_v13, %v4770_v37  ;;  %v2525_v3 = vmax.f32 %v2489_v17, 0.0  ;;  %2563 = sbr.rel (%p3018_p13) target bundleno = 1747 (0x6d3), region = 110  ;;  %v2565_v37 = vld [vmem:[%s4909_s3] sm:$0xff] (!%p3018_p13) }
 0x5f1   : > { %v2526_v27 = vmax.f32 %v2492_v31, 0.0 }
 0x5f3   : > { %v2542_v5 = vpack.c.bf16 %v2526_v27, %v2525_v3 }
 0x5f5   : > { %2560 = vst [vmem:[#allocation2 + $0x78] sm:$0xff] %v2542_v5  ;;  %3646 = vmatprep.subr.bf16.mxu0 (!%p3018_p13), %v2542_v5 }
 0x5f6   : > { %3648 = vmatpush3.bf16.msra.mxu0 %v4809_v25 }
 0x5f9   : > { %2632 = vmatmul.mubr.f32.vlgmr.msra.gmra.mrb[0].mxu0 %v2565_v37 }
 0x6cc   : > { %v3553_v57 = vpop.f32.mrb[0].mxu0 }
 0x6cd   : > { %v3554_v38 = vpop.f32.mrb[1].mxu0 }
 0x6ce   : > { %v3555_v44 = vadd.f32 %v3554_v38, %v3553_v57 }
 0x6d0   : > { %v2637_v32 = vadd.f32 %v3555_v44, %v2564_v22 }
 0x6d2   : > { %2638 = vst [vmem:[#allocation4] sm:$0xff] %v2637_v32 }
 0x6d3 PF: > { %2642 = sbr.rel (!%p387_p1) target bundleno = 1995 (0x7cb), region = 114  ;;  %v3861_v0 = vld [vmem:[#allocation9] sm:$0xff] (%p387_p1)   ;;  %v4022_v9 = vmov (%p387_p1), 0.0   ;;  %v3862_v11 = vld [vmem:[#allocation9 + $0x8] sm:$0xff] (%p387_p1)   ;;  %vm4023_vm0 = vmmov (%p387_p1), 0   ;;  %v3863_v25 = vld [vmem:[#allocation9 + $0x10] sm:$0xff] (%p387_p1)  }
 0x6d4   : > { %3565 = vmatprep.subr.bf16.mxu0 (%p387_p1), %v4022_v9  ;;  %3581 = vmatprep.mubr.msk.bf16.mxu0 (%p387_p1), %vm4023_vm0, %v4022_v9  ;;  %v3864_v60 = vld [vmem:[#allocation9 + $0x18] sm:$0xff] (%p387_p1)   ;;  %v3865_v4 = vld [vmem:[#allocation9 + $0x20] sm:$0xff] (%p387_p1)   ;;  %v3866_v6 = vld [vmem:[#allocation9 + $0x28] sm:$0xff] (%p387_p1)  }
 0x6d5   : > { %3566 = vmatpush3.bf16.msra.mxu0 (%p387_p1), %v3861_v0  ;;  %v3867_v23 = vld [vmem:[#allocation9 + $0x30] sm:$0xff] (%p387_p1)   ;;  %v3868_v15 = vld [vmem:[#allocation9 + $0x38] sm:$0xff] (%p387_p1)  }
 0x6d6   : > { %3567 = vmatprep.subr.bf16.mxu0 (%p387_p1), %v4022_v9  ;;  %v3020_v20 = vld [vmem:[%s4913_s7] ss:$0 sm:$0xff] (%p387_p1) }
 0x6d9   : > { %3568 = vmatpush3.bf16.msra.mxu0 (%p387_p1), %v3862_v11  ;;  %v2643_v39 = vld [vmem:[#allocation4] sm:$0xff] (%p387_p1) }
 0x6da   : > { %3569 = vmatprep.subr.bf16.mxu0 %v4022_v9  ;;  %v2644_v34 = vpack.c.bf16 %v2643_v39, %v2643_v39 }
 0x6dd   : > { %3570 = vmatpush3.bf16.msra.mxu0 %v3863_v25 }
 0x6de   : > { %3571 = vmatprep.subr.bf16.mxu0 %v4022_v9 }
 0x6e1   : > { %3572 = vmatpush3.bf16.msra.mxu0 %v3864_v60 }
 0x6e2   : > { %3573 = vmatprep.subr.bf16.mxu0 %v4022_v9 }
 0x6e5   : > { %3574 = vmatpush3.bf16.msra.mxu0 %v3865_v4 }
 0x6e6   : > { %3575 = vmatprep.subr.bf16.mxu0 %v4022_v9 }
 0x6e9   : > { %3576 = vmatpush3.bf16.msra.mxu0 %v3866_v6 }
 0x6ea   : > { %3577 = vmatprep.subr.bf16.mxu0 %v4022_v9 }
 0x6ed   : > { %3578 = vmatpush3.bf16.msra.mxu0 %v3867_v23 }
 0x6ee   : > { %3579 = vmatprep.subr.bf16.mxu0 %v4022_v9 }
 0x6f1   : > { %3580 = vmatpush3.bf16.msra.mxu0 %v3868_v15 }
 0x6f4   : > { %3582 = vmatmul.mubr.bf16.vlgmr.msra.gmra.mrb[0].mxu0 %v2644_v34 }
 0x7c7   : > { %v2750_v40 = vpop.f32.mrb[0].mxu0 }
 0x7c8   : > { %v2751_v28 = vadd.f32 %v3020_v20, %v2750_v40  ;;  %v3583_v10 = vpop.f32.mrb[1].mxu0 }
 0x7c9   : > { %v2753_v43 = vpop.f32.mrb[2].mxu0 }
 0x7ca   : > { %2756 = vst [vmem:[#allocation11] sm:$0xff] %v2751_v28  ;;  %v3584_v41 = vpop.f32.mrb[3].mxu0 }
 0x7cb PF: > { %s4928_s19 = sadd.s32 4294967295, %s4013_s10   ;;  %s4024_s27 = smov [#allocation11]  }
 0x7cc   : > { %p4862_p2 = scmp.eq.s32.totalorder %s4928_s19, 2  ;;  %s2764_s20 = sshll.u32 %s4024_s27, 4  ;;  %s2765_s20 = int_to_ptr.vmem [resolvable:$true] %s2764_s20 }
 0x7cd   : > { %s3927_s12 = scalar_lea.vmem %s2765_s20, 128  ;;  %p3934_p6 = scmp.lt.s32.totalorder %s2765_s20, %s2765_s20 }
 0x7ce   : > { %p3928_p3 = scmp.ne.s32.totalorder %s2765_s20, %s3927_s12  ;;  %p3935_p7 = scmp.lt.s32.totalorder %s3927_s12, %s3927_s12 }
 0x7d0   : > { %p3929_p0 = pnand %p3928_p3, %p4862_p2  ;;  %p3936_p1 = por %p3935_p7, %p3934_p6 }
 0x7d2   : > { %p3930_p12 = pneg %p3929_p0 }
 0x7d4   : > { %p3937_p4 = pnand %p3936_p1, %p3930_p12 }
 0x7d6   : > { %3940 = shalt.err (!%p3937_p4)
}
 0x7d7   : > { %s3941_s22 = scalar_lea.hbm %s4914_s8, 128 }
 0x7d8   : > { %p3942_p5 = scmp.ne.s32.totalorder %s4914_s8, %s3941_s22  ;;  %p3947_p10 = scmp.lt.u32.totalorder %s3941_s22, %s4914_s8 }
 0x7da   : > { %p3943_p8 = pnand %p3942_p5, %p4862_p2 }
 0x7dc   : > { %p3944_p9 = pneg %p3943_p8 }
 0x7de   : > { %p3949_p11 = pnand %p3947_p10, %p3944_p9 }
 0x7e0   : > { %3952 = shalt.err (!%p3949_p11)
}
 0x7e1   : > { %3656 = dma.vmem_to_hbm [thread:$0]  (%p4862_p2), %s2765_s20, 128, %s4914_s8, [#allocation8]  }
 0x7e2   : > { %3988 = dma.done.wait (%p4862_p2), [#allocation8], 128  }
 0x7e3   : > { %3990 = vsyncadd (%p4862_p2), [#allocation8], 4294967168 }
 0x7e4 PF: > { %s23_s10 = sadd.s32 1, %s4013_s10   ;;  %s4930_s27 = smov %s3997_s28 }
 0x7e5   : > { %p20_p13 = scmp.ge.s32.totalorder %s23_s10, 5   ;;  %s4931_s28 = smov %s4001_s29 }
 0x7e6   : > { %s4932_s29 = smov %s4155_s25  ;;  %s4933_s30 = smov %s4009_s9 }
 0x7e7   : > { %s4934_s9 = smov %s4936_s18  ;;  %22 = sbr.rel (!%p20_p13) target bundleno = 6 (0x6), region = 170 }
 0x7ee   :  { %2777 = vsyncpa [#allocation7], 1 }
 0x7ef   :  { %2779 = vsyncpa [#allocation7 + $0x1], 1 }
 0x7f0   :  { %2780 = vsyncpa [#allocation10], 1 }
 0x7f1   :  { %2781 = vsyncpa [#allocation8], 1 }
 0x7f2   :  { %2783 = vsyncpa [#allocation8 + $0x1], 1 }
 0x7f3   :  { %2784 = vsyncmov [#allocation5] }
 0x7f6   :  { %s2785_s14 = vpop.sfrf %2784 }
 0x7f7   :  { %p3033_p2 = scmp.ne.s32.totalorder %s2785_s14, 0 }
 0x7f9   :  { %2789 = shalt.err (%p3033_p2)  }

</bundles_post_ra>
